<compile_context>
chip_gen: v7x
topology: tpu7x:2x2x1
jax: 0.10.0
libtpu: 0.0.40
codegen_flags: <defaults>
</compile_context>

<pallas_src>
import functools

import jax
import jax.numpy as jnp
import numpy as np
from jax.experimental import pallas as pl
from jax.experimental.pallas import tpu as pltpu


def _round_up(x, m):
    return (x + m - 1) // m * m


def lstm_kernel(x_ref, wih_ref, whh_ref, b_ref, wfc_ref, bfc_ref, out_ref,
                xg_ref, h_ref, c_ref, *, seq_len, mask_tail, unroll):
    """One grid step = one CH-step time chunk of the recurrence for one padded batch block.

    x_ref:   (CH, Bb, Ep)   bf16  time-major activation chunk (auto-pipelined from HBM)
    wih_ref: (Ep, 4*Hp)     bf16  gate blocks [i|f|o|g], each Hp lanes wide (resident VMEM)
    whh_ref: (Hp, 4*Hp)     f32   kept f32 for recurrence accuracy (resident VMEM)
    b_ref:   (1, 4*Hp)      f32   pre-summed b_ih + b_hh
    wfc_ref: (Hp, Cp) bf16, bfc_ref: (1, Cp) f32
    out_ref: (Bb, Cp)       f32   written only on the last time chunk
    xg_ref:  (CH, Bb, 4*Hp) f32   scratch: this chunk's input projection
    h_ref/c_ref: (Bb, Hp)   f32   scratch: recurrent state carried across time chunks
    """
    t_blk = pl.program_id(1)
    CH, Bb, Ep = x_ref.shape
    Hp = whh_ref.shape[0]

    # Reset carries at the first time chunk of each batch block.
    @pl.when(t_blk == 0)
    def _():
        h_ref[...] = jnp.zeros_like(h_ref)
        c_ref[...] = jnp.zeros_like(c_ref)

    # ---- Phase 1: input projection for this chunk as one MXU matmul (bf16 in, f32 acc),
    # bias added once per chunk (never inside the serial loop).
    x_flat = x_ref[...].reshape(CH * Bb, Ep)
    xg = jnp.dot(x_flat, wih_ref[...], preferred_element_type=jnp.float32) + b_ref[...]
    xg_ref[...] = xg.reshape(CH, Bb, 4 * Hp)

    # ---- Phase 2: serial recurrence; only h @ W_hh sits on the per-step critical path.
    # TODO(synk): pltpu.matmul_push_rhs once + matmul_acc_lhs/matmul_pop per step would avoid
    # re-loading the (Hp x 4Hp) RHS into the systolic array every step.
    def step(tt, carry):
        h, c = carry
        gates = xg_ref[tt] + jnp.dot(h, whh_ref[...], preferred_element_type=jnp.float32)
        sig = jax.nn.sigmoid(gates[:, : 3 * Hp])          # fused [i|f|o] sigmoids (one EUP op)
        i_g = sig[:, 0 * Hp:1 * Hp]
        f_g = sig[:, 1 * Hp:2 * Hp]
        o_g = sig[:, 2 * Hp:3 * Hp]
        g_g = jnp.tanh(gates[:, 3 * Hp:4 * Hp])
        c_new = f_g * c + i_g * g_g
        h_new = o_g * jnp.tanh(c_new)
        if mask_tail:                                     # only traced when T % CH != 0
            valid = (t_blk * CH + tt) < seq_len
            h_new = jnp.where(valid, h_new, h)
            c_new = jnp.where(valid, c_new, c)
        return h_new, c_new

    h, c = jax.lax.fori_loop(0, CH, step, (h_ref[...], c_ref[...]), unroll=unroll)
    h_ref[...] = h
    c_ref[...] = c

    # ---- Phase 3 (last chunk only): last hidden -> dropout (identity in eval) -> fc.
    # TODO(synk): training-mode dropout (p=0.2) would need pltpu.prng_* masking here.
    @pl.when(t_blk == pl.num_programs(1) - 1)
    def _():
        out_ref[...] = (jnp.dot(h.astype(wfc_ref.dtype), wfc_ref[...],
                                preferred_element_type=jnp.float32) + bfc_ref[...])


def lstm_model_forward(x_ids, params, *, batch_block=None, time_chunk=None):
    """Full forward pass of LSTMModel (eval mode).

    The embedding gather (plain JAX glue) writes the padded, time-major, bf16 activation layout
    directly, so there is no extra transpose/pad pass over the activations in HBM; the input
    projection, LSTM recurrence and fc projection run in one time-chunked Pallas kernel.
    """
    B, T = x_ids.shape
    E = params["embedding"].shape[1]
    H = params["w_hh"].shape[0]
    C = params["w_fc"].shape[1]

    # TPU-tile padding: batch -> mult of 8 (sublanes), feature dims -> mult of 128 (lanes).
    Ep, Hp, Cp = _round_up(E, 128), _round_up(H, 128), _round_up(C, 128)
    Bp = _round_up(B, 8)
    # Batch rows per grid step (v6e has room for up to 256; keep <=128 so v7x's 64 MiB fits).
    B_BLK = batch_block if batch_block is not None else min(Bp, 128)
    Bp = _round_up(Bp, B_BLK)
    # Time-chunk size: VMEM scales with CH, not with T.
    CH = time_chunk if time_chunk is not None else min(T, 32)
    Tp = _round_up(T, CH)
    NT = Tp // CH
    mask_tail = Tp != T

    # Embedding gather straight into (Tp, Bp, Ep) bf16 time-major layout.
    emb_p = jnp.pad(params["embedding"], ((0, 0), (0, Ep - E))).astype(jnp.bfloat16)
    ids_p = jnp.pad(x_ids, ((0, Bp - B), (0, Tp - T)))     # padded ids irrelevant (masked / sliced off)
    x_tm = emb_p[ids_p.T]                                  # (Tp, Bp, Ep) bf16

    # Weights: each gate block widened H -> Hp (lane-aligned slices); gate order permuted from
    # PyTorch [i, f, g, o] to [i, f, o, g] so the three sigmoid gates are one contiguous slice.
    # Zero padding keeps padded hidden units exactly 0 (i=f=o=0.5, g=0 -> c=h=0) and zero W_fc
    # rows kill any contribution, so results are unchanged.
    gate_perm = jnp.array([0, 1, 3, 2], dtype=jnp.int32)

    def pad_gates(w2d, rows_to):
        r = w2d.shape[0]
        w4 = w2d.reshape(r, 4, H)[:, gate_perm, :]
        w4 = jnp.pad(w4, ((0, rows_to - r), (0, 0), (0, Hp - H)))
        return w4.reshape(rows_to, 4 * Hp)

    w_ih_p = pad_gates(params["w_ih"], Ep).astype(jnp.bfloat16)        # (Ep, 4Hp) bf16 MXU operand
    w_hh_p = pad_gates(params["w_hh"], Hp)                             # (Hp, 4Hp) f32 (accuracy)
    b_p = pad_gates(params["b_ih"] + params["b_hh"], 1)                # (1, 4Hp) pre-summed
    w_fc_p = jnp.pad(params["w_fc"], ((0, Hp - H), (0, Cp - C))).astype(jnp.bfloat16)
    b_fc_p = jnp.pad(params["b_fc"], ((0, 0), (0, Cp - C)))            # (1, Cp) f32

    # Explicit VMEM budget (defaults are only 16/32 MiB scoped; cap at 64 MiB so it is safe on
    # v7x's 64 MiB physical VMEM — raise the cap on v5e/v6e if larger tiles are wanted).
    bf2, f4 = 2, 4
    need = (2 * CH * B_BLK * Ep * bf2                      # double-buffered x chunk
            + Ep * 4 * Hp * bf2 + Hp * 4 * Hp * f4         # resident W_ih / W_hh (single buffer)
            + 8 * 4 * Hp * f4 + Hp * Cp * bf2 + 8 * Cp * f4
            + 2 * B_BLK * Cp * f4                          # output block
            + CH * B_BLK * 4 * Hp * f4                     # xg scratch
            + 2 * B_BLK * Hp * f4)                         # h, c carries
    vmem_limit = int(min(max(2 * need + (2 << 20), 16 << 20), 64 << 20))

    kernel = functools.partial(lstm_kernel, seq_len=T, mask_tail=mask_tail,
                               unroll=min(8, CH))

    def resident_vmem_spec():
        # Whole array placed in VMEM once (no per-step re-blocking, no double buffering).
        return pl.BlockSpec(memory_space=pltpu.MemorySpace.VMEM)

    out_p = pl.pallas_call(
        kernel,
        out_shape=jax.ShapeDtypeStruct((Bp, Cp), jnp.float32),
        grid_spec=pltpu.PrefetchScalarGridSpec(
            num_scalar_prefetch=0,
            grid=(Bp // B_BLK, NT),                                    # (batch blocks, time chunks)
            in_specs=[
                pl.BlockSpec((CH, B_BLK, Ep), lambda b, t: (t, b, 0)),  # x chunk (auto-pipelined)
                resident_vmem_spec(),                                   # W_ih
                resident_vmem_spec(),                                   # W_hh
                resident_vmem_spec(),                                   # b_ih + b_hh
                resident_vmem_spec(),                                   # W_fc
                resident_vmem_spec(),                                   # b_fc
            ],
            out_specs=pl.BlockSpec((B_BLK, Cp), lambda b, t: (b, 0)),   # resident, written at last t
            scratch_shapes=[
                pltpu.VMEM((CH, B_BLK, 4 * Hp), jnp.float32),           # per-chunk input projection
                pltpu.VMEM((B_BLK, Hp), jnp.float32),                   # h carry
                pltpu.VMEM((B_BLK, Hp), jnp.float32),                   # c carry
            ],
        ),
        compiler_params=pltpu.CompilerParams(
            dimension_semantics=("parallel", "arbitrary"),
            vmem_limit_bytes=vmem_limit,
        ),
    )(x_tm, w_ih_p, w_hh_p, b_p, w_fc_p, b_fc_p)

    return out_p[:B, :C]


def reference_forward(x_ids, params):
    """Pure-JAX f32 reference of the same math (for validation)."""
    emb = params["embedding"][x_ids]                # (B, T, E)
    B, T, E = emb.shape
    H = params["w_hh"].shape[0]
    h = jnp.zeros((B, H), jnp.float32)
    c = jnp.zeros((B, H), jnp.float32)
    for t in range(T):
        gates = (emb[:, t, :] @ params["w_ih"] + h @ params["w_hh"]
                 + params["b_ih"] + params["b_hh"])
        i_g = jax.nn.sigmoid(gates[:, 0 * H:1 * H])
        f_g = jax.nn.sigmoid(gates[:, 1 * H:2 * H])
        g_g = jnp.tanh(gates[:, 2 * H:3 * H])
        o_g = jax.nn.sigmoid(gates[:, 3 * H:4 * H])
        c = f_g * c + i_g * g_g
        h = o_g * jnp.tanh(c)
    return h @ params["w_fc"] + params["b_fc"]


def init_params(key, vocab_size, embedding_dim, hidden_dim, num_classes):
    ks = jax.random.split(key, 7)
    scale = 0.1
    emb = scale * jax.random.normal(ks[0], (vocab_size, embedding_dim), jnp.float32)
    emb = emb.at[0].set(0.0)                        # padding_idx=0
    return {
        "embedding": emb,
        # PyTorch stores weight_ih_l0 as (4H, E); we keep the transposed (E, 4H) layout.
        "w_ih": scale * jax.random.normal(ks[1], (embedding_dim, 4 * hidden_dim), jnp.float32),
        "w_hh": scale * jax.random.normal(ks[2], (hidden_dim, 4 * hidden_dim), jnp.float32),
        "b_ih": scale * jax.random.normal(ks[3], (1, 4 * hidden_dim), jnp.float32),
        "b_hh": scale * jax.random.normal(ks[4], (1, 4 * hidden_dim), jnp.float32),
        "w_fc": scale * jax.random.normal(ks[5], (hidden_dim, num_classes), jnp.float32),
        "b_fc": scale * jax.random.normal(ks[6], (1, num_classes), jnp.float32),
    }


if __name__ == "__main__":
    VOCAB, EMB, HID, NCLS = 50, 16, 32, 4
    B, T = 2, 8

    key = jax.random.PRNGKey(0)
    pkey, xkey = jax.random.split(key)
    params = init_params(pkey, VOCAB, EMB, HID, NCLS)
    x_ids = jax.random.randint(xkey, (B, T), 0, VOCAB, dtype=jnp.int32)

    out = lstm_model_forward(x_ids, params)
    out = jax.block_until_ready(out)

    ref = reference_forward(x_ids, params)
    # bf16 MXU operands (x, W_ih, W_fc) -> relaxed tolerance; recurrence itself stays f32.
    np.testing.assert_allclose(np.asarray(out), np.asarray(ref), rtol=2e-2, atol=2e-2)

    print("KERNEL_OK")
</pallas_src>

<mosaic_0001>
module attributes {stable_mosaic.version = 11 : i64} {
  func.func @lstm_kernel(%arg0: i32, %arg1: i32, %arg2: memref<8x8x128xbf16, #tpu.memory_space<vmem>>, %arg3: memref<128x512xbf16, #tpu.memory_space<vmem>>, %arg4: memref<128x512xf32, #tpu.memory_space<vmem>>, %arg5: memref<1x512xf32, #tpu.memory_space<vmem>>, %arg6: memref<128x128xbf16, #tpu.memory_space<vmem>>, %arg7: memref<1x128xf32, #tpu.memory_space<vmem>>, %arg8: memref<8x128xf32, #tpu.memory_space<vmem>>, %arg9: memref<8x8x512xf32, #tpu.memory_space<vmem>>, %arg10: memref<8x128xf32, #tpu.memory_space<vmem>>, %arg11: memref<8x128xf32, #tpu.memory_space<vmem>>) attributes {dimension_semantics = [#tpu.dimension_semantics<parallel>, #tpu.dimension_semantics<arbitrary>], iteration_bounds = array<i64: 1, 1>, scalar_prefetch = 0 : i64, scratch_operands = 3 : i64, tpu.core_type = #tpu.core_type<tc>, window_params = [{transform_indices = @transform_0, window_bounds = array<i64: 8, 8, 128>}, {pipeline_mode = #tpu.pipeline_mode<synchronous>, transform_indices = @transform_1, window_bounds = array<i64: 128, 512>}, {pipeline_mode = #tpu.pipeline_mode<synchronous>, transform_indices = @transform_2, window_bounds = array<i64: 128, 512>}, {pipeline_mode = #tpu.pipeline_mode<synchronous>, transform_indices = @transform_3, window_bounds = array<i64: 1, 512>}, {pipeline_mode = #tpu.pipeline_mode<synchronous>, transform_indices = @transform_4, window_bounds = array<i64: 128, 128>}, {pipeline_mode = #tpu.pipeline_mode<synchronous>, transform_indices = @transform_5, window_bounds = array<i64: 1, 128>}, {transform_indices = @transform_6, window_bounds = array<i64: 8, 128>}]} {
    %c0_i32 = arith.constant 0 : i32
    %0 = arith.cmpi eq, %arg1, %c0_i32 : i32
    %1 = arith.extui %0 : i1 to i32
    %c0_i32_0 = arith.constant 0 : i32
    %2 = arith.cmpi ne, %1, %c0_i32_0 : i32
    scf.if %2 {
      %cst_69 = arith.constant 0.000000e+00 : f32
      %195 = vector.broadcast %cst_69 : f32 to vector<8x128xf32>
      %c0_70 = arith.constant 0 : index
      %c0_71 = arith.constant 0 : index
      %196 = vector.load %arg10[%c0_70, %c0_71] : memref<8x128xf32, #tpu.memory_space<vmem>>, vector<8x128xf32>
      tpu.vector_store %arg10[%c0_70, %c0_71], %195 {strides = array<i32>} : memref<8x128xf32, #tpu.memory_space<vmem>>, vector<8x128xf32>,
      %cst_72 = arith.constant 0.000000e+00 : f32
      %197 = vector.broadcast %cst_72 : f32 to vector<8x128xf32>
      %c0_73 = arith.constant 0 : index
      %c0_74 = arith.constant 0 : index
      %198 = vector.load %arg11[%c0_73, %c0_74] : memref<8x128xf32, #tpu.memory_space<vmem>>, vector<8x128xf32>
      tpu.vector_store %arg11[%c0_73, %c0_74], %197 {strides = array<i32>} : memref<8x128xf32, #tpu.memory_space<vmem>>, vector<8x128xf32>,
    } else {
    }
    %c0 = arith.constant 0 : index
    %c0_1 = arith.constant 0 : index
    %c0_2 = arith.constant 0 : index
    %3 = vector.load %arg2[%c0, %c0_1, %c0_2] : memref<8x8x128xbf16, #tpu.memory_space<vmem>>, vector<8x8x128xbf16>
    %4 = vector.shape_cast %3 : vector<8x8x128xbf16> to vector<64x128xbf16>
    %c0_3 = arith.constant 0 : index
    %c0_4 = arith.constant 0 : index
    %5 = vector.load %arg3[%c0_3, %c0_4] : memref<128x512xbf16, #tpu.memory_space<vmem>>, vector<128x512xbf16>
    %cst = arith.constant dense<0.000000e+00> : vector<64x512xf32>
    %6 = tpu.matmul %4, %5, %cst {dimension_numbers = #tpu.dot_dimension_numbers<[1], [0], [0], [1], [0, 0, 1, 1], [], []>} : vector<64x128xbf16>, vector<128x512xbf16>, vector<64x512xf32> -> vector<64x512xf32>
    %c0_5 = arith.constant 0 : index
    %c0_6 = arith.constant 0 : index
    %7 = vector.load %arg5[%c0_5, %c0_6] : memref<1x512xf32, #tpu.memory_space<vmem>>, vector<1x512xf32>
    %8 = vector.broadcast %7 : vector<1x512xf32> to vector<64x512xf32>
    %9 = arith.addf %6, %8 : vector<64x512xf32>
    %10 = vector.shape_cast %9 : vector<64x512xf32> to vector<8x8x512xf32>
    %c0_7 = arith.constant 0 : index
    %c0_8 = arith.constant 0 : index
    %c0_9 = arith.constant 0 : index
    %11 = vector.load %arg9[%c0_7, %c0_8, %c0_9] : memref<8x8x512xf32, #tpu.memory_space<vmem>>, vector<8x8x512xf32>
    tpu.vector_store %arg9[%c0_7, %c0_8, %c0_9], %10 {strides = array<i32>} : memref<8x8x512xf32, #tpu.memory_space<vmem>>, vector<8x8x512xf32>,
    %c0_10 = arith.constant 0 : index
    %c0_11 = arith.constant 0 : index
    %12 = vector.load %arg10[%c0_10, %c0_11] : memref<8x128xf32, #tpu.memory_space<vmem>>, vector<8x128xf32>
    %c0_12 = arith.constant 0 : index
    %c0_13 = arith.constant 0 : index
    %13 = vector.load %arg11[%c0_12, %c0_13] : memref<8x128xf32, #tpu.memory_space<vmem>>, vector<8x128xf32>
    %c0_i32_14 = arith.constant 0 : i32
    %14 = arith.index_cast %c0_i32_14 : i32 to index
    %c0_15 = arith.constant 0 : index
    %c0_16 = arith.constant 0 : index
    %15 = vector.load %arg9[%14, %c0_15, %c0_16] : memref<8x8x512xf32, #tpu.memory_space<vmem>>, vector<1x8x512xf32>
    %16 = vector.shape_cast %15 : vector<1x8x512xf32> to vector<8x512xf32>
    %c0_17 = arith.constant 0 : index
    %c0_18 = arith.constant 0 : index
    %17 = vector.load %arg4[%c0_17, %c0_18] : memref<128x512xf32, #tpu.memory_space<vmem>>, vector<128x512xf32>
    %cst_19 = arith.constant dense<0.000000e+00> : vector<8x512xf32>
    %18 = tpu.matmul %12, %17, %cst_19 {dimension_numbers = #tpu.dot_dimension_numbers<[1], [0], [0], [1], [0, 0, 1, 1], [], []>} : vector<8x128xf32>, vector<128x512xf32>, vector<8x512xf32> -> vector<8x512xf32>
    %19 = arith.addf %16, %18 : vector<8x512xf32>
    %20 = vector.extract_strided_slice %19 {offsets = [0, 0], sizes = [8, 384], strides = [1, 1]} : vector<8x512xf32> to vector<8x384xf32>
    %21 = arith.negf %20 : vector<8x384xf32>
    %22 = math.exp %21 : vector<8x384xf32>
    %cst_20 = arith.constant 1.000000e+00 : f32
    %23 = vector.broadcast %cst_20 : f32 to vector<8x384xf32>
    %24 = arith.addf %23, %22 : vector<8x384xf32>
    %25 = arith.divf %23, %24 : vector<8x384xf32>
    %26 = vector.extract_strided_slice %25 {offsets = [0, 0], sizes = [8, 128], strides = [1, 1]} : vector<8x384xf32> to vector<8x128xf32>
    %27 = vector.extract_strided_slice %25 {offsets = [0, 128], sizes = [8, 128], strides = [1, 1]} : vector<8x384xf32> to vector<8x128xf32>
    %28 = vector.extract_strided_slice %25 {offsets = [0, 256], sizes = [8, 128], strides = [1, 1]} : vector<8x384xf32> to vector<8x128xf32>
    %29 = vector.extract_strided_slice %19 {offsets = [0, 384], sizes = [8, 128], strides = [1, 1]} : vector<8x512xf32> to vector<8x128xf32>
    %30 = math.tanh %29 : vector<8x128xf32>
    %31 = arith.mulf %27, %13 : vector<8x128xf32>
    %32 = arith.mulf %26, %30 : vector<8x128xf32>
    %33 = arith.addf %31, %32 : vector<8x128xf32>
    %34 = math.tanh %33 : vector<8x128xf32>
    %35 = arith.mulf %28, %34 : vector<8x128xf32>
    %c1_i32 = arith.constant 1 : i32
    %36 = arith.index_cast %c1_i32 : i32 to index
    %c0_21 = arith.constant 0 : index
    %c0_22 = arith.constant 0 : index
    %37 = vector.load %arg9[%36, %c0_21, %c0_22] : memref<8x8x512xf32, #tpu.memory_space<vmem>>, vector<1x8x512xf32>
    %38 = vector.shape_cast %37 : vector<1x8x512xf32> to vector<8x512xf32>
    %c0_23 = arith.constant 0 : index
    %c0_24 = arith.constant 0 : index
    %39 = vector.load %arg4[%c0_23, %c0_24] : memref<128x512xf32, #tpu.memory_space<vmem>>, vector<128x512xf32>
    %cst_25 = arith.constant dense<0.000000e+00> : vector<8x512xf32>
    %40 = tpu.matmul %35, %39, %cst_25 {dimension_numbers = #tpu.dot_dimension_numbers<[1], [0], [0], [1], [0, 0, 1, 1], [], []>} : vector<8x128xf32>, vector<128x512xf32>, vector<8x512xf32> -> vector<8x512xf32>
    %41 = arith.addf %38, %40 : vector<8x512xf32>
    %42 = vector.extract_strided_slice %41 {offsets = [0, 0], sizes = [8, 384], strides = [1, 1]} : vector<8x512xf32> to vector<8x384xf32>
    %43 = arith.negf %42 : vector<8x384xf32>
    %44 = math.exp %43 : vector<8x384xf32>
    %cst_26 = arith.constant 1.000000e+00 : f32
    %45 = vector.broadcast %cst_26 : f32 to vector<8x384xf32>
    %46 = arith.addf %45, %44 : vector<8x384xf32>
    %47 = arith.divf %45, %46 : vector<8x384xf32>
    %48 = vector.extract_strided_slice %47 {offsets = [0, 0], sizes = [8, 128], strides = [1, 1]} : vector<8x384xf32> to vector<8x128xf32>
    %49 = vector.extract_strided_slice %47 {offsets = [0, 128], sizes = [8, 128], strides = [1, 1]} : vector<8x384xf32> to vector<8x128xf32>
    %50 = vector.extract_strided_slice %47 {offsets = [0, 256], sizes = [8, 128], strides = [1, 1]} : vector<8x384xf32> to vector<8x128xf32>
    %51 = vector.extract_strided_slice %41 {offsets = [0, 384], sizes = [8, 128], strides = [1, 1]} : vector<8x512xf32> to vector<8x128xf32>
    %52 = math.tanh %51 : vector<8x128xf32>
    %53 = arith.mulf %49, %33 : vector<8x128xf32>
    %54 = arith.mulf %48, %52 : vector<8x128xf32>
    %55 = arith.addf %53, %54 : vector<8x128xf32>
    %56 = math.tanh %55 : vector<8x128xf32>
    %57 = arith.mulf %50, %56 : vector<8x128xf32>
    %c2_i32 = arith.constant 2 : i32
    %58 = arith.index_cast %c2_i32 : i32 to index
    %c0_27 = arith.constant 0 : index
    %c0_28 = arith.constant 0 : index
    %59 = vector.load %arg9[%58, %c0_27, %c0_28] : memref<8x8x512xf32, #tpu.memory_space<vmem>>, vector<1x8x512xf32>
    %60 = vector.shape_cast %59 : vector<1x8x512xf32> to vector<8x512xf32>
    %c0_29 = arith.constant 0 : index
    %c0_30 = arith.constant 0 : index
    %61 = vector.load %arg4[%c0_29, %c0_30] : memref<128x512xf32, #tpu.memory_space<vmem>>, vector<128x512xf32>
    %cst_31 = arith.constant dense<0.000000e+00> : vector<8x512xf32>
    %62 = tpu.matmul %57, %61, %cst_31 {dimension_numbers = #tpu.dot_dimension_numbers<[1], [0], [0], [1], [0, 0, 1, 1], [], []>} : vector<8x128xf32>, vector<128x512xf32>, vector<8x512xf32> -> vector<8x512xf32>
    %63 = arith.addf %60, %62 : vector<8x512xf32>
    %64 = vector.extract_strided_slice %63 {offsets = [0, 0], sizes = [8, 384], strides = [1, 1]} : vector<8x512xf32> to vector<8x384xf32>
    %65 = arith.negf %64 : vector<8x384xf32>
    %66 = math.exp %65 : vector<8x384xf32>
    %cst_32 = arith.constant 1.000000e+00 : f32
    %67 = vector.broadcast %cst_32 : f32 to vector<8x384xf32>
    %68 = arith.addf %67, %66 : vector<8x384xf32>
    %69 = arith.divf %67, %68 : vector<8x384xf32>
    %70 = vector.extract_strided_slice %69 {offsets = [0, 0], sizes = [8, 128], strides = [1, 1]} : vector<8x384xf32> to vector<8x128xf32>
    %71 = vector.extract_strided_slice %69 {offsets = [0, 128], sizes = [8, 128], strides = [1, 1]} : vector<8x384xf32> to vector<8x128xf32>
    %72 = vector.extract_strided_slice %69 {offsets = [0, 256], sizes = [8, 128], strides = [1, 1]} : vector<8x384xf32> to vector<8x128xf32>
    %73 = vector.extract_strided_slice %63 {offsets = [0, 384], sizes = [8, 128], strides = [1, 1]} : vector<8x512xf32> to vector<8x128xf32>
    %74 = math.tanh %73 : vector<8x128xf32>
    %75 = arith.mulf %71, %55 : vector<8x128xf32>
    %76 = arith.mulf %70, %74 : vector<8x128xf32>
    %77 = arith.addf %75, %76 : vector<8x128xf32>
    %78 = math.tanh %77 : vector<8x128xf32>
    %79 = arith.mulf %72, %78 : vector<8x128xf32>
    %c3_i32 = arith.constant 3 : i32
    %80 = arith.index_cast %c3_i32 : i32 to index
    %c0_33 = arith.constant 0 : index
    %c0_34 = arith.constant 0 : index
    %81 = vector.load %arg9[%80, %c0_33, %c0_34] : memref<8x8x512xf32, #tpu.memory_space<vmem>>, vector<1x8x512xf32>
    %82 = vector.shape_cast %81 : vector<1x8x512xf32> to vector<8x512xf32>
    %c0_35 = arith.constant 0 : index
    %c0_36 = arith.constant 0 : index
    %83 = vector.load %arg4[%c0_35, %c0_36] : memref<128x512xf32, #tpu.memory_space<vmem>>, vector<128x512xf32>
    %cst_37 = arith.constant dense<0.000000e+00> : vector<8x512xf32>
    %84 = tpu.matmul %79, %83, %cst_37 {dimension_numbers = #tpu.dot_dimension_numbers<[1], [0], [0], [1], [0, 0, 1, 1], [], []>} : vector<8x128xf32>, vector<128x512xf32>, vector<8x512xf32> -> vector<8x512xf32>
    %85 = arith.addf %82, %84 : vector<8x512xf32>
    %86 = vector.extract_strided_slice %85 {offsets = [0, 0], sizes = [8, 384], strides = [1, 1]} : vector<8x512xf32> to vector<8x384xf32>
    %87 = arith.negf %86 : vector<8x384xf32>
    %88 = math.exp %87 : vector<8x384xf32>
    %cst_38 = arith.constant 1.000000e+00 : f32
    %89 = vector.broadcast %cst_38 : f32 to vector<8x384xf32>
    %90 = arith.addf %89, %88 : vector<8x384xf32>
    %91 = arith.divf %89, %90 : vector<8x384xf32>
    %92 = vector.extract_strided_slice %91 {offsets = [0, 0], sizes = [8, 128], strides = [1, 1]} : vector<8x384xf32> to vector<8x128xf32>
    %93 = vector.extract_strided_slice %91 {offsets = [0, 128], sizes = [8, 128], strides = [1, 1]} : vector<8x384xf32> to vector<8x128xf32>
    %94 = vector.extract_strided_slice %91 {offsets = [0, 256], sizes = [8, 128], strides = [1, 1]} : vector<8x384xf32> to vector<8x128xf32>
    %95 = vector.extract_strided_slice %85 {offsets = [0, 384], sizes = [8, 128], strides = [1, 1]} : vector<8x512xf32> to vector<8x128xf32>
    %96 = math.tanh %95 : vector<8x128xf32>
    %97 = arith.mulf %93, %77 : vector<8x128xf32>
    %98 = arith.mulf %92, %96 : vector<8x128xf32>
    %99 = arith.addf %97, %98 : vector<8x128xf32>
    %100 = math.tanh %99 : vector<8x128xf32>
    %101 = arith.mulf %94, %100 : vector<8x128xf32>
    %c4_i32 = arith.constant 4 : i32
    %102 = arith.index_cast %c4_i32 : i32 to index
    %c0_39 = arith.constant 0 : index
    %c0_40 = arith.constant 0 : index
    %103 = vector.load %arg9[%102, %c0_39, %c0_40] : memref<8x8x512xf32, #tpu.memory_space<vmem>>, vector<1x8x512xf32>
    %104 = vector.shape_cast %103 : vector<1x8x512xf32> to vector<8x512xf32>
    %c0_41 = arith.constant 0 : index
    %c0_42 = arith.constant 0 : index
    %105 = vector.load %arg4[%c0_41, %c0_42] : memref<128x512xf32, #tpu.memory_space<vmem>>, vector<128x512xf32>
    %cst_43 = arith.constant dense<0.000000e+00> : vector<8x512xf32>
    %106 = tpu.matmul %101, %105, %cst_43 {dimension_numbers = #tpu.dot_dimension_numbers<[1], [0], [0], [1], [0, 0, 1, 1], [], []>} : vector<8x128xf32>, vector<128x512xf32>, vector<8x512xf32> -> vector<8x512xf32>
    %107 = arith.addf %104, %106 : vector<8x512xf32>
    %108 = vector.extract_strided_slice %107 {offsets = [0, 0], sizes = [8, 384], strides = [1, 1]} : vector<8x512xf32> to vector<8x384xf32>
    %109 = arith.negf %108 : vector<8x384xf32>
    %110 = math.exp %109 : vector<8x384xf32>
    %cst_44 = arith.constant 1.000000e+00 : f32
    %111 = vector.broadcast %cst_44 : f32 to vector<8x384xf32>
    %112 = arith.addf %111, %110 : vector<8x384xf32>
    %113 = arith.divf %111, %112 : vector<8x384xf32>
    %114 = vector.extract_strided_slice %113 {offsets = [0, 0], sizes = [8, 128], strides = [1, 1]} : vector<8x384xf32> to vector<8x128xf32>
    %115 = vector.extract_strided_slice %113 {offsets = [0, 128], sizes = [8, 128], strides = [1, 1]} : vector<8x384xf32> to vector<8x128xf32>
    %116 = vector.extract_strided_slice %113 {offsets = [0, 256], sizes = [8, 128], strides = [1, 1]} : vector<8x384xf32> to vector<8x128xf32>
    %117 = vector.extract_strided_slice %107 {offsets = [0, 384], sizes = [8, 128], strides = [1, 1]} : vector<8x512xf32> to vector<8x128xf32>
    %118 = math.tanh %117 : vector<8x128xf32>
    %119 = arith.mulf %115, %99 : vector<8x128xf32>
    %120 = arith.mulf %114, %118 : vector<8x128xf32>
    %121 = arith.addf %119, %120 : vector<8x128xf32>
    %122 = math.tanh %121 : vector<8x128xf32>
    %123 = arith.mulf %116, %122 : vector<8x128xf32>
    %c5_i32 = arith.constant 5 : i32
    %124 = arith.index_cast %c5_i32 : i32 to index
    %c0_45 = arith.constant 0 : index
    %c0_46 = arith.constant 0 : index
    %125 = vector.load %arg9[%124, %c0_45, %c0_46] : memref<8x8x512xf32, #tpu.memory_space<vmem>>, vector<1x8x512xf32>
    %126 = vector.shape_cast %125 : vector<1x8x512xf32> to vector<8x512xf32>
    %c0_47 = arith.constant 0 : index
    %c0_48 = arith.constant 0 : index
    %127 = vector.load %arg4[%c0_47, %c0_48] : memref<128x512xf32, #tpu.memory_space<vmem>>, vector<128x512xf32>
    %cst_49 = arith.constant dense<0.000000e+00> : vector<8x512xf32>
    %128 = tpu.matmul %123, %127, %cst_49 {dimension_numbers = #tpu.dot_dimension_numbers<[1], [0], [0], [1], [0, 0, 1, 1], [], []>} : vector<8x128xf32>, vector<128x512xf32>, vector<8x512xf32> -> vector<8x512xf32>
    %129 = arith.addf %126, %128 : vector<8x512xf32>
    %130 = vector.extract_strided_slice %129 {offsets = [0, 0], sizes = [8, 384], strides = [1, 1]} : vector<8x512xf32> to vector<8x384xf32>
    %131 = arith.negf %130 : vector<8x384xf32>
    %132 = math.exp %131 : vector<8x384xf32>
    %cst_50 = arith.constant 1.000000e+00 : f32
    %133 = vector.broadcast %cst_50 : f32 to vector<8x384xf32>
    %134 = arith.addf %133, %132 : vector<8x384xf32>
    %135 = arith.divf %133, %134 : vector<8x384xf32>
    %136 = vector.extract_strided_slice %135 {offsets = [0, 0], sizes = [8, 128], strides = [1, 1]} : vector<8x384xf32> to vector<8x128xf32>
    %137 = vector.extract_strided_slice %135 {offsets = [0, 128], sizes = [8, 128], strides = [1, 1]} : vector<8x384xf32> to vector<8x128xf32>
    %138 = vector.extract_strided_slice %135 {offsets = [0, 256], sizes = [8, 128], strides = [1, 1]} : vector<8x384xf32> to vector<8x128xf32>
    %139 = vector.extract_strided_slice %129 {offsets = [0, 384], sizes = [8, 128], strides = [1, 1]} : vector<8x512xf32> to vector<8x128xf32>
    %140 = math.tanh %139 : vector<8x128xf32>
    %141 = arith.mulf %137, %121 : vector<8x128xf32>
    %142 = arith.mulf %136, %140 : vector<8x128xf32>
    %143 = arith.addf %141, %142 : vector<8x128xf32>
    %144 = math.tanh %143 : vector<8x128xf32>
    %145 = arith.mulf %138, %144 : vector<8x128xf32>
    %c6_i32 = arith.constant 6 : i32
    %146 = arith.index_cast %c6_i32 : i32 to index
    %c0_51 = arith.constant 0 : index
    %c0_52 = arith.constant 0 : index
    %147 = vector.load %arg9[%146, %c0_51, %c0_52] : memref<8x8x512xf32, #tpu.memory_space<vmem>>, vector<1x8x512xf32>
    %148 = vector.shape_cast %147 : vector<1x8x512xf32> to vector<8x512xf32>
    %c0_53 = arith.constant 0 : index
    %c0_54 = arith.constant 0 : index
    %149 = vector.load %arg4[%c0_53, %c0_54] : memref<128x512xf32, #tpu.memory_space<vmem>>, vector<128x512xf32>
    %cst_55 = arith.constant dense<0.000000e+00> : vector<8x512xf32>
    %150 = tpu.matmul %145, %149, %cst_55 {dimension_numbers = #tpu.dot_dimension_numbers<[1], [0], [0], [1], [0, 0, 1, 1], [], []>} : vector<8x128xf32>, vector<128x512xf32>, vector<8x512xf32> -> vector<8x512xf32>
    %151 = arith.addf %148, %150 : vector<8x512xf32>
    %152 = vector.extract_strided_slice %151 {offsets = [0, 0], sizes = [8, 384], strides = [1, 1]} : vector<8x512xf32> to vector<8x384xf32>
    %153 = arith.negf %152 : vector<8x384xf32>
    %154 = math.exp %153 : vector<8x384xf32>
    %cst_56 = arith.constant 1.000000e+00 : f32
    %155 = vector.broadcast %cst_56 : f32 to vector<8x384xf32>
    %156 = arith.addf %155, %154 : vector<8x384xf32>
    %157 = arith.divf %155, %156 : vector<8x384xf32>
    %158 = vector.extract_strided_slice %157 {offsets = [0, 0], sizes = [8, 128], strides = [1, 1]} : vector<8x384xf32> to vector<8x128xf32>
    %159 = vector.extract_strided_slice %157 {offsets = [0, 128], sizes = [8, 128], strides = [1, 1]} : vector<8x384xf32> to vector<8x128xf32>
    %160 = vector.extract_strided_slice %157 {offsets = [0, 256], sizes = [8, 128], strides = [1, 1]} : vector<8x384xf32> to vector<8x128xf32>
    %161 = vector.extract_strided_slice %151 {offsets = [0, 384], sizes = [8, 128], strides = [1, 1]} : vector<8x512xf32> to vector<8x128xf32>
    %162 = math.tanh %161 : vector<8x128xf32>
    %163 = arith.mulf %159, %143 : vector<8x128xf32>
    %164 = arith.mulf %158, %162 : vector<8x128xf32>
    %165 = arith.addf %163, %164 : vector<8x128xf32>
    %166 = math.tanh %165 : vector<8x128xf32>
    %167 = arith.mulf %160, %166 : vector<8x128xf32>
    %c7_i32 = arith.constant 7 : i32
    %168 = arith.index_cast %c7_i32 : i32 to index
    %c0_57 = arith.constant 0 : index
    %c0_58 = arith.constant 0 : index
    %169 = vector.load %arg9[%168, %c0_57, %c0_58] : memref<8x8x512xf32, #tpu.memory_space<vmem>>, vector<1x8x512xf32>
    %170 = vector.shape_cast %169 : vector<1x8x512xf32> to vector<8x512xf32>
    %c0_59 = arith.constant 0 : index
    %c0_60 = arith.constant 0 : index
    %171 = vector.load %arg4[%c0_59, %c0_60] : memref<128x512xf32, #tpu.memory_space<vmem>>, vector<128x512xf32>
    %cst_61 = arith.constant dense<0.000000e+00> : vector<8x512xf32>
    %172 = tpu.matmul %167, %171, %cst_61 {dimension_numbers = #tpu.dot_dimension_numbers<[1], [0], [0], [1], [0, 0, 1, 1], [], []>} : vector<8x128xf32>, vector<128x512xf32>, vector<8x512xf32> -> vector<8x512xf32>
    %173 = arith.addf %170, %172 : vector<8x512xf32>
    %174 = vector.extract_strided_slice %173 {offsets = [0, 0], sizes = [8, 384], strides = [1, 1]} : vector<8x512xf32> to vector<8x384xf32>
    %175 = arith.negf %174 : vector<8x384xf32>
    %176 = math.exp %175 : vector<8x384xf32>
    %cst_62 = arith.constant 1.000000e+00 : f32
    %177 = vector.broadcast %cst_62 : f32 to vector<8x384xf32>
    %178 = arith.addf %177, %176 : vector<8x384xf32>
    %179 = arith.divf %177, %178 : vector<8x384xf32>
    %180 = vector.extract_strided_slice %179 {offsets = [0, 0], sizes = [8, 128], strides = [1, 1]} : vector<8x384xf32> to vector<8x128xf32>
    %181 = vector.extract_strided_slice %179 {offsets = [0, 128], sizes = [8, 128], strides = [1, 1]} : vector<8x384xf32> to vector<8x128xf32>
    %182 = vector.extract_strided_slice %179 {offsets = [0, 256], sizes = [8, 128], strides = [1, 1]} : vector<8x384xf32> to vector<8x128xf32>
    %183 = vector.extract_strided_slice %173 {offsets = [0, 384], sizes = [8, 128], strides = [1, 1]} : vector<8x512xf32> to vector<8x128xf32>
    %184 = math.tanh %183 : vector<8x128xf32>
    %185 = arith.mulf %181, %165 : vector<8x128xf32>
    %186 = arith.mulf %180, %184 : vector<8x128xf32>
    %187 = arith.addf %185, %186 : vector<8x128xf32>
    %188 = math.tanh %187 : vector<8x128xf32>
    %189 = arith.mulf %182, %188 : vector<8x128xf32>
    %c8_i32 = arith.constant 8 : i32
    %c0_63 = arith.constant 0 : index
    %c0_64 = arith.constant 0 : index
    %190 = vector.load %arg10[%c0_63, %c0_64] : memref<8x128xf32, #tpu.memory_space<vmem>>, vector<8x128xf32>
    tpu.vector_store %arg10[%c0_63, %c0_64], %189 {strides = array<i32>} : memref<8x128xf32, #tpu.memory_space<vmem>>, vector<8x128xf32>,
    %c0_65 = arith.constant 0 : index
    %c0_66 = arith.constant 0 : index
    %191 = vector.load %arg11[%c0_65, %c0_66] : memref<8x128xf32, #tpu.memory_space<vmem>>, vector<8x128xf32>
    tpu.vector_store %arg11[%c0_65, %c0_66], %187 {strides = array<i32>} : memref<8x128xf32, #tpu.memory_space<vmem>>, vector<8x128xf32>,
    %c0_i32_67 = arith.constant 0 : i32
    %192 = arith.cmpi eq, %arg1, %c0_i32_67 : i32
    %193 = arith.extui %192 : i1 to i32
    %c0_i32_68 = arith.constant 0 : i32
    %194 = arith.cmpi ne, %193, %c0_i32_68 : i32
    scf.if %194 {
      %195 = arith.truncf %189 : vector<8x128xf32> to vector<8x128xbf16>
      %c0_69 = arith.constant 0 : index
      %c0_70 = arith.constant 0 : index
      %196 = vector.load %arg6[%c0_69, %c0_70] : memref<128x128xbf16, #tpu.memory_space<vmem>>, vector<128x128xbf16>
      %cst_71 = arith.constant dense<0.000000e+00> : vector<8x128xf32>
      %197 = tpu.matmul %195, %196, %cst_71 {dimension_numbers = #tpu.dot_dimension_numbers<[1], [0], [0], [1], [0, 0, 1, 1], [], []>} : vector<8x128xbf16>, vector<128x128xbf16>, vector<8x128xf32> -> vector<8x128xf32>
      %c0_72 = arith.constant 0 : index
      %c0_73 = arith.constant 0 : index
      %198 = vector.load %arg7[%c0_72, %c0_73] : memref<1x128xf32, #tpu.memory_space<vmem>>, vector<1x128xf32>
      %199 = vector.broadcast %198 : vector<1x128xf32> to vector<8x128xf32>
      %200 = arith.addf %197, %199 : vector<8x128xf32>
      %c0_74 = arith.constant 0 : index
      %c0_75 = arith.constant 0 : index
      %201 = vector.load %arg8[%c0_74, %c0_75] : memref<8x128xf32, #tpu.memory_space<vmem>>, vector<8x128xf32>
      tpu.vector_store %arg8[%c0_74, %c0_75], %200 {strides = array<i32>} : memref<8x128xf32, #tpu.memory_space<vmem>>, vector<8x128xf32>,
    } else {
    }
    return
  }
  func.func @transform_0(%arg0: i32, %arg1: i32) -> (i32, i32, i32) {
    %c0_i32 = arith.constant 0 : i32
    %c0_i32_0 = arith.constant 0 : i32
    return %arg1, %arg0, %c0_i32 : i32, i32, i32
  }
  func.func @transform_1(%arg0: i32, %arg1: i32) -> (i32, i32) {
    %c0_i32 = arith.constant 0 : i32
    %c0_i32_0 = arith.constant 0 : i32
    %c0_i32_1 = arith.constant 0 : i32
    return %c0_i32, %c0_i32_0 : i32, i32
  }
  func.func @transform_2(%arg0: i32, %arg1: i32) -> (i32, i32) {
    %c0_i32 = arith.constant 0 : i32
    %c0_i32_0 = arith.constant 0 : i32
    %c0_i32_1 = arith.constant 0 : i32
    return %c0_i32, %c0_i32_0 : i32, i32
  }
  func.func @transform_3(%arg0: i32, %arg1: i32) -> (i32, i32) {
    %c0_i32 = arith.constant 0 : i32
    %c0_i32_0 = arith.constant 0 : i32
    %c0_i32_1 = arith.constant 0 : i32
    return %c0_i32, %c0_i32_0 : i32, i32
  }
  func.func @transform_4(%arg0: i32, %arg1: i32) -> (i32, i32) {
    %c0_i32 = arith.constant 0 : i32
    %c0_i32_0 = arith.constant 0 : i32
    %c0_i32_1 = arith.constant 0 : i32
    return %c0_i32, %c0_i32_0 : i32, i32
  }
  func.func @transform_5(%arg0: i32, %arg1: i32) -> (i32, i32) {
    %c0_i32 = arith.constant 0 : i32
    %c0_i32_0 = arith.constant 0 : i32
    %c0_i32_1 = arith.constant 0 : i32
    return %c0_i32, %c0_i32_0 : i32, i32
  }
  func.func @transform_6(%arg0: i32, %arg1: i32) -> (i32, i32) {
    %c0_i32 = arith.constant 0 : i32
    %c0_i32_0 = arith.constant 0 : i32
    return %arg0, %c0_i32 : i32, i32
  }
}

</mosaic_0001>

<bundles_post_ra>
// kernel: tpu_custom_call.1
= control target key start
LH: loop header
LB: loop body
LE: loop exit
PB: predicated region body
PF: predicated region fallthrough
CT: control target
= control target key end

     0   :  { %11 = vsyncpa [#allocation6], 0  ;;  %s3640_s0 = inlined_call_operand.hbm [shape: bf16[8,8,128], index: 0, kind: input, shape index: {}]   ;;  %s3641_s1 = inlined_call_operand.hbm [shape: bf16[128,512], index: 1, kind: input, shape index: {}]   ;;  %s3642_s2 = inlined_call_operand.hbm [shape: f32[128,512], index: 2, kind: input, shape index: {}]   ;;  %s3643_s3 = inlined_call_operand.vmem [shape: f32[1,512], index: 3, kind: input, shape index: {}]   ;;  %s3644_s4 = inlined_call_operand.hbm [shape: bf16[128,128], index: 4, kind: input, shape index: {}]   ;;  %s3645_s5 = inlined_call_operand.vmem [shape: f32[1,128], index: 5, kind: input, shape index: {}]   ;;  %s3646_s6 = inlined_call_operand.hbm [shape: f32[8,128], index: 6, kind: output, shape index: {}]  }
   0x1   :  { %12 = vsyncpa [#allocation9], 0 }
   0x2   :  { %13 = vsyncpa [#allocation12], 0 }
   0x3   :  { %14 = vsyncpa [#allocation7], 0  ;;  %s3040_s21 = smov [#allocation8]   ;;  %s2922_s25 = scalar_lea.hbm %s3641_s1, 4096 }
   0x4   :  { %s32_s22 = sshll.u32 %s3040_s21, 4  ;;  %p2923_p0 = scmp.ne.s32.totalorder %s3641_s1, %s2922_s25  ;;  %s33_s22 = int_to_ptr.vmem [resolvable:$true] %s32_s22 }
   0x5   :  { %p2926_p1 = scmp.lt.u32.totalorder %s2922_s25, %s3641_s1 }
   0x7   :  { %p2928_p2 = pnand %p2926_p1, %p2923_p0 }
   0x9   :  { %2931 = shalt.err (!%p2928_p2)
}
   0xa   :  { %s2932_s30 = scalar_lea.vmem %s33_s22, 4096  ;;  %p2937_p4 = scmp.lt.s32.totalorder %s33_s22, %s33_s22 }
   0xb   :  { %p2933_p3 = scmp.ne.s32.totalorder %s33_s22, %s2932_s30  ;;  %p2938_p5 = scmp.lt.s32.totalorder %s2932_s30, %s2932_s30 }
   0xd   :  { %p2939_p6 = por %p2938_p5, %p2937_p4 }
   0xf   :  { %p2940_p7 = pnand %p2939_p6, %p2933_p3 }
  0x11   :  { %2943 = shalt.err (!%p2940_p7)
}
  0x12   :  { %s3041_s7 = smov 256   ;;  %s3042_s8 = smov 16  }
  0x13   :  { %38 = dma.hbm_to_vmem [thread:$0]  %s3641_s1, 4096, %s33_s22, [#allocation9], %s3041_s7, %s3041_s7, %s3042_s8  }
  0x14   :  { %s3043_s11 = smov [#allocation5]   ;;  %s2944_s15 = scalar_lea.hbm %s3640_s0, 512 }
  0x15   :  { %s20_s12 = sshll.u32 %s3043_s11, 4  ;;  %p2945_p8 = scmp.ne.s32.totalorder %s3640_s0, %s2944_s15  ;;  %s21_s12 = int_to_ptr.vmem [resolvable:$true] %s20_s12 }
  0x16   :  { %p2948_p9 = scmp.lt.u32.totalorder %s2944_s15, %s3640_s0 }
  0x18   :  { %p2950_p10 = pnand %p2948_p9, %p2945_p8 }
  0x1a   :  { %2953 = shalt.err (!%p2950_p10)
}
  0x1b   :  { %s2954_s20 = scalar_lea.vmem %s21_s12, 512  ;;  %p2959_p12 = scmp.lt.s32.totalorder %s21_s12, %s21_s12 }
  0x1c   :  { %p2955_p11 = scmp.ne.s32.totalorder %s21_s12, %s2954_s20  ;;  %p2960_p13 = scmp.lt.s32.totalorder %s2954_s20, %s2954_s20 }
  0x1e   :  { %p2961_p0 = por %p2960_p13, %p2959_p12 }
  0x20   :  { %p2962_p1 = pnand %p2961_p0, %p2955_p11 }
  0x22   :  { %2965 = shalt.err (!%p2962_p1)
}
  0x23   :  { %s3044_s1 = smov 64   ;;  %s3045_s21 = smov 4  }
  0x24   :  { %26 = dma.hbm_to_vmem [thread:$0]  %s3640_s0, 512, %s21_s12, [#allocation6], %s3044_s1, %s3044_s1, %s3045_s21  }
  0x25   :  { %s3046_s24 = smov [#allocation10]   ;;  %s2966_s28 = scalar_lea.hbm %s3642_s2, 8192 }
  0x26   :  { %s44_s25 = sshll.u32 %s3046_s24, 4  ;;  %p2967_p2 = scmp.ne.s32.totalorder %s3642_s2, %s2966_s28  ;;  %s45_s25 = int_to_ptr.vmem [resolvable:$true] %s44_s25 }
  0x27   :  { %p2970_p3 = scmp.lt.u32.totalorder %s2966_s28, %s3642_s2 }
  0x29   :  { %p2972_p4 = pnand %p2970_p3, %p2967_p2 }
  0x2b   :  { %2975 = shalt.err (!%p2972_p4)
}
  0x2c   :  { %s2976_s9 = scalar_lea.vmem %s45_s25, 8192  ;;  %p2981_p6 = scmp.lt.s32.totalorder %s45_s25, %s45_s25 }
  0x2d   :  { %p2977_p5 = scmp.ne.s32.totalorder %s45_s25, %s2976_s9  ;;  %p2982_p7 = scmp.lt.s32.totalorder %s2976_s9, %s2976_s9 }
  0x2f   :  { %p2983_p8 = por %p2982_p7, %p2981_p6 }
  0x31   :  { %p2984_p9 = pnand %p2983_p8, %p2977_p5 }
  0x33   :  { %2987 = shalt.err (!%p2984_p9)
}
  0x34   :  { %s3047_s0 = smov 512   ;;  %s3048_s10 = smov 32  }
  0x35   :  { %50 = dma.hbm_to_vmem [thread:$0]  %s3642_s2, 8192, %s45_s25, [#allocation9], %s3047_s0, %s3047_s0, %s3048_s10  }
  0x36   :  { %s3049_s13 = smov [#allocation11]   ;;  %s2988_s17 = scalar_lea.hbm %s3644_s4, 1024 }
  0x37   :  { %s58_s14 = sshll.u32 %s3049_s13, 4  ;;  %p2989_p10 = scmp.ne.s32.totalorder %s3644_s4, %s2988_s17  ;;  %s59_s14 = int_to_ptr.vmem [resolvable:$true] %s58_s14 }
  0x38   :  { %p2992_p11 = scmp.lt.u32.totalorder %s2988_s17, %s3644_s4 }
  0x3a   :  { %p2994_p12 = pnand %p2992_p11, %p2989_p10 }
  0x3c   :  { %2997 = shalt.err (!%p2994_p12)
}
  0x3d   :  { %s2998_s23 = scalar_lea.vmem %s59_s14, 1024  ;;  %p3003_p0 = scmp.lt.s32.totalorder %s59_s14, %s59_s14 }
  0x3e   :  { %p2999_p13 = scmp.ne.s32.totalorder %s59_s14, %s2998_s23  ;;  %p3004_p1 = scmp.lt.s32.totalorder %s2998_s23, %s2998_s23 }
  0x40   :  { %p3005_p2 = por %p3004_p1, %p3003_p0 }
  0x42   :  { %p3006_p3 = pnand %p3005_p2, %p2999_p13 }
  0x44   :  { %3009 = shalt.err (!%p3006_p3)
}
  0x45   :  { %64 = dma.hbm_to_vmem [thread:$0]  %s3644_s4, 1024, %s59_s14, [#allocation12], %s3044_s1, %s3044_s1, %s3045_s21  }
  0x46   :  { %3032 = dma.done.wait [#allocation6], 512  }
  0x47   :  { %3033 = vsyncadd [#allocation6], 4294966784 }
  0x48   :  { %3034 = dma.done.wait [#allocation9], 12288  }
  0x49   :  { %3035 = vsyncadd [#allocation9], 4294955008 }
  0x4a   :  { %3036 = dma.done.wait [#allocation12], 1024  }
  0x4b   :  { %3037 = vsyncadd [#allocation12], 4294966272  ;;  %v3050_v0 = vmov 0   ;;  %v3647_v1 = vmov 0.0   ;;  %v2734_v2 = vld [vmem:[#allocation8 + $0x4] ss:$16 sps:$4 sm:$0xff]  }
  0x4c   :  { %364 = vmatprep.mubr.bf16.mxu1 %v3050_v0  ;;  %644 = vmatprep.mubr.f32.mxu0 %v3647_v1  ;;  %v2736_v3 = vld [vmem:[#allocation8] ss:$16 sps:$4 sm:$0xff]   ;;  %v517_v4 = vld [vmem:[#allocation10 + $0x8] sm:$0xff]  ;;  %v2737_v10 = vld [vmem:[#allocation8 + $0x24] ss:$16 sps:$4 sm:$0xff]   ;;  %vm3052_vm0 = vmmov 0  }
  0x4d   :  { %v521_v5 = vld [vmem:[#allocation10 + $0x28] sm:$0xff]  ;;  %332 = vmatprep.subr.bf16.mxu1 %v2734_v2  ;;  %v516_v7 = vld [vmem:[#allocation10] sm:$0xff]  ;;  %s3053_s25 = smov [#allocation13]  }
  0x4e   :  { %v3145_v6 = vpack.c.bf16 %v521_v5, %v517_v4  ;;  %v520_v8 = vld [vmem:[#allocation10 + $0x20] sm:$0xff]  ;;  %333 = vmatpush1.bf16.msra.mxu1 %v2736_v3  ;;  %v525_v12 = vld [vmem:[#allocation10 + $0x48] sm:$0xff]  ;;  %s2099_s26 = sshll.u32 %s3053_s25, 4  ;;  %s2100_s26 = int_to_ptr.vmem [resolvable:$true] %s2099_s26 }
  0x4f   :  { %v3147_v9 = vpack.c.bf16 %v520_v8, %v516_v7  ;;  %v2739_v11 = vld [vmem:[#allocation8 + $0x20] ss:$16 sps:$4 sm:$0xff]   ;;  %v529_v13 = vld [vmem:[#allocation10 + $0x68] sm:$0xff]  ;;  %334 = vmatprep.subr.bf16.mxu1 %v2737_v10  ;;  %v2740_v18 = vld [vmem:[#allocation8 + $0x44] ss:$16 sps:$4 sm:$0xff]   ;;  %s3010_s27 = scalar_lea.vmem %s2100_s26, 128  ;;  %p3015_p5 = scmp.lt.s32.totalorder %s2100_s26, %s2100_s26 }
  0x50   :  { %2209 = vmatprep.subr.bf16.mxu0 %v3145_v6  ;;  %v524_v14 = vld [vmem:[#allocation10 + $0x40] sm:$0xff]  ;;  %v3151_v15 = vpack.c.bf16 %v529_v13, %v525_v12  ;;  %v533_v20 = vld [vmem:[#allocation10 + $0x88] sm:$0xff]  ;;  %p3011_p4 = scmp.ne.s32.totalorder %s2100_s26, %s3010_s27  ;;  %p3016_p6 = scmp.lt.s32.totalorder %s3010_s27, %s3010_s27 }
  0x51   :  { %2211 = vmatpush1.bf16.msra.mxu0 %v3147_v9  ;;  %v528_v16 = vld [vmem:[#allocation10 + $0x60] sm:$0xff]  ;;  %v537_v21 = vld [vmem:[#allocation10 + $0xa8] sm:$0xff] }
  0x52   :  { %v3153_v17 = vpack.c.bf16 %v528_v16, %v524_v14  ;;  %v2742_v19 = vld [vmem:[#allocation8 + $0x40] ss:$16 sps:$4 sm:$0xff]   ;;  %335 = vmatpush1.bf16.msra.mxu1 %v2739_v11  ;;  %2213 = vmatprep.subr.bf16.mxu0 %v3151_v15  ;;  %v3156_v24 = vpack.c.bf16 %v537_v21, %v533_v20  ;;  %v2743_v25 = vld [vmem:[#allocation8 + $0x64] ss:$16 sps:$4 sm:$0xff]   ;;  %v541_v27 = vld [vmem:[#allocation10 + $0xc8] sm:$0xff]  ;;  %p3017_p7 = por %p3016_p6, %p3015_p5 }
  0x53   :  { %v532_v22 = vld [vmem:[#allocation10 + $0x80] sm:$0xff]  ;;  %336 = vmatprep.subr.bf16.mxu1 %v2740_v18  ;;  %v545_v28 = vld [vmem:[#allocation10 + $0xe8] sm:$0xff] }
  0x54   :  { %v536_v23 = vld [vmem:[#allocation10 + $0xa0] sm:$0xff]  ;;  %v3162_v29 = vpack.c.bf16 %v545_v28, %v541_v27  ;;  %v549_v34 = vld [vmem:[#allocation10 + $0x108] sm:$0xff]  ;;  %p3018_p8 = pnand %p3017_p7, %p3011_p4 }
  0x55   :  { %2215 = vmatpush1.bf16.msra.mxu0 %v3153_v17  ;;  %v3159_v26 = vpack.c.bf16 %v536_v23, %v532_v22  ;;  %v540_v30 = vld [vmem:[#allocation10 + $0xc0] sm:$0xff]  ;;  %v553_v35 = vld [vmem:[#allocation10 + $0x128] sm:$0xff] }
  0x56   :  { %2217 = vmatprep.subr.bf16.mxu0 %v3156_v24  ;;  %v544_v31 = vld [vmem:[#allocation10 + $0xe0] sm:$0xff]  ;;  %337 = vmatpush1.bf16.msra.mxu1 %v2742_v19  ;;  %v3168_v37 = vpack.c.bf16 %v553_v35, %v549_v34  ;;  %v557_v41 = vld [vmem:[#allocation10 + $0x148] sm:$0xff]  ;;  %v3209_v19 = vld [vmem:[#allocation5 + $0x10] sm:$0xff]  }
  0x57   :  { %v2745_v32 = vld [vmem:[#allocation8 + $0x60] ss:$16 sps:$4 sm:$0xff]   ;;  %338 = vmatprep.subr.bf16.mxu1 %v2743_v25  ;;  %v2746_v33 = vld [vmem:[#allocation8 + $0x84] ss:$16 sps:$4 sm:$0xff]   ;;  %v3165_v36 = vpack.c.bf16 %v544_v31, %v540_v30  ;;  %v561_v42 = vld [vmem:[#allocation10 + $0x168] sm:$0xff] }
  0x58   :  { %v548_v38 = vld [vmem:[#allocation10 + $0x100] sm:$0xff]  ;;  %v3174_v46 = vpack.c.bf16 %v561_v42, %v557_v41  ;;  %v565_v49 = vld [vmem:[#allocation10 + $0x188] sm:$0xff]  ;;  %v3217_v25 = vld [vmem:[#allocation5 + $0x18] sm:$0xff]  }
  0x59   :  { %2219 = vmatpush1.bf16.msra.mxu0 %v3159_v26  ;;  %v552_v39 = vld [vmem:[#allocation10 + $0x120] sm:$0xff]  ;;  %v569_v50 = vld [vmem:[#allocation10 + $0x1a8] sm:$0xff]  ;;  %v519_v30 = vld [vmem:[#allocation10 + $0x18] sm:$0xff] }
  0x5a   :  { %2221 = vmatprep.subr.bf16.mxu0 %v3162_v29  ;;  %339 = vmatpush1.bf16.msra.mxu1 %v2745_v32  ;;  %v2748_v40 = vld [vmem:[#allocation8 + $0x80] ss:$16 sps:$4 sm:$0xff]   ;;  %v2749_v43 = vld [vmem:[#allocation8 + $0xa4] ss:$16 sps:$4 sm:$0xff]   ;;  %v3171_v44 = vpack.c.bf16 %v552_v39, %v548_v38  ;;  %v3180_v55 = vpack.c.bf16 %v569_v50, %v565_v49  ;;  %v573_v57 = vld [vmem:[#allocation10 + $0x1c8] sm:$0xff] }
  0x5b   :  { %340 = vmatprep.subr.bf16.mxu1 %v2746_v33  ;;  %v2751_v45 = vld [vmem:[#allocation8 + $0xa0] ss:$16 sps:$4 sm:$0xff]   ;;  %v2752_v51 = vld [vmem:[#allocation8 + $0xc4] ss:$16 sps:$4 sm:$0xff]   ;;  %v577_v58 = vld [vmem:[#allocation10 + $0x1e8] sm:$0xff] }
  0x5c   :  { %v556_v47 = vld [vmem:[#allocation10 + $0x140] sm:$0xff]  ;;  %v3186_v62 = vpack.c.bf16 %v577_v58, %v573_v57  ;;  %v2761_v3 = vld [vmem:[#allocation8 + $0xc] ss:$16 sps:$4 sm:$0xff]   ;;  %v2759_v7 = vld [vmem:[#allocation8 + $0x8] ss:$16 sps:$4 sm:$0xff]  }
  0x5d   :  { %2223 = vmatpush1.bf16.msra.mxu0 %v3165_v36  ;;  %v560_v48 = vld [vmem:[#allocation10 + $0x160] sm:$0xff]  ;;  %v2764_v8 = vld [vmem:[#allocation8 + $0x2c] ss:$16 sps:$4 sm:$0xff]   ;;  %v2762_v10 = vld [vmem:[#allocation8 + $0x28] ss:$16 sps:$4 sm:$0xff]  }
  0x5e   :  { %2225 = vmatprep.subr.bf16.mxu0 %v3168_v37  ;;  %341 = vmatpush1.bf16.msra.mxu1 %v2748_v40  ;;  %v3177_v52 = vpack.c.bf16 %v560_v48, %v556_v47  ;;  %v2754_v53 = vld [vmem:[#allocation8 + $0xc0] ss:$16 sps:$4 sm:$0xff]   ;;  %v2755_v59 = vld [vmem:[#allocation8 + $0xe4] ss:$16 sps:$4 sm:$0xff]   ;;  %v2768_v11 = vld [vmem:[#allocation8 + $0x4c] ss:$16 sps:$4 sm:$0xff]  }
  0x5f   :  { %342 = vmatprep.subr.bf16.mxu1 %v2749_v43  ;;  %v564_v54 = vld [vmem:[#allocation10 + $0x180] sm:$0xff]  ;;  %v3201_v12 = vld [vmem:[#allocation5 + $0x8] sm:$0xff]   ;;  %v523_v31 = vld [vmem:[#allocation10 + $0x38] sm:$0xff] }
  0x60   :  { %v568_v56 = vld [vmem:[#allocation10 + $0x1a0] sm:$0xff]  ;;  %v2766_v13 = vld [vmem:[#allocation8 + $0x48] ss:$16 sps:$4 sm:$0xff]   ;;  %v2771_v14 = vld [vmem:[#allocation8 + $0x6c] ss:$16 sps:$4 sm:$0xff]   ;;  %v3224_v33 = vpack.c.bf16 %v523_v31, %v519_v30 }
  0x61   :  { %2227 = vmatpush1.bf16.msra.mxu0 %v3171_v44  ;;  %v3183_v60 = vpack.c.bf16 %v568_v56, %v564_v54  ;;  %v572_v61 = vld [vmem:[#allocation10 + $0x1c0] sm:$0xff]  ;;  %v2769_v16 = vld [vmem:[#allocation8 + $0x68] ss:$16 sps:$4 sm:$0xff]   ;;  %v2775_v18 = vld [vmem:[#allocation8 + $0x8c] ss:$16 sps:$4 sm:$0xff]  }
  0x62   :  { %2229 = vmatprep.subr.bf16.mxu0 %v3174_v46  ;;  %343 = vmatpush1.bf16.msra.mxu1 %v2751_v45  ;;  %v576_v63 = vld [vmem:[#allocation10 + $0x1e0] sm:$0xff]  ;;  %v2773_v20 = vld [vmem:[#allocation8 + $0x88] ss:$16 sps:$4 sm:$0xff]   ;;  %v2778_v21 = vld [vmem:[#allocation8 + $0xac] ss:$16 sps:$4 sm:$0xff]  }
  0x63   :  { %344 = vmatprep.subr.bf16.mxu1 %v2752_v51  ;;  %v2757_v2 = vld [vmem:[#allocation8 + $0xe0] ss:$16 sps:$4 sm:$0xff]   ;;  %v3189_v4 = vpack.c.bf16 %v576_v63, %v572_v61  ;;  %v2776_v22 = vld [vmem:[#allocation8 + $0xa8] ss:$16 sps:$4 sm:$0xff]   ;;  %v2782_v23 = vld [vmem:[#allocation8 + $0xcc] ss:$16 sps:$4 sm:$0xff]  }
  0x64   :  { %v3192_v5 = vld [vmem:[#allocation5] sm:$0xff]   ;;  %v2780_v27 = vld [vmem:[#allocation8 + $0xc8] ss:$16 sps:$4 sm:$0xff]   ;;  %v2785_v28 = vld [vmem:[#allocation8 + $0xec] ss:$16 sps:$4 sm:$0xff]  }
  0x65   :  { %2231 = vmatpush1.bf16.msra.mxu0 %v3177_v52  ;;  %v2783_v32 = vld [vmem:[#allocation8 + $0xe8] ss:$16 sps:$4 sm:$0xff]   ;;  %v518_v34 = vld [vmem:[#allocation10 + $0x10] sm:$0xff] }
  0x66   :  { %2233 = vmatprep.subr.bf16.mxu0 %v3180_v55  ;;  %345 = vmatpush1.bf16.msra.mxu1 %v2754_v53  ;;  %v522_v35 = vld [vmem:[#allocation10 + $0x30] sm:$0xff]  ;;  %v527_v38 = vld [vmem:[#allocation10 + $0x58] sm:$0xff] }
  0x67   :  { %346 = vmatprep.subr.bf16.mxu1 %v2755_v59  ;;  %v531_v39 = vld [vmem:[#allocation10 + $0x78] sm:$0xff]  ;;  %v3228_v40 = vpack.c.bf16 %v522_v35, %v518_v34  ;;  %v526_v42 = vld [vmem:[#allocation10 + $0x50] sm:$0xff] }
  0x68   :  { %v3231_v41 = vpack.c.bf16 %v531_v39, %v527_v38  ;;  %v530_v43 = vld [vmem:[#allocation10 + $0x70] sm:$0xff]  ;;  %v535_v45 = vld [vmem:[#allocation10 + $0x98] sm:$0xff]  ;;  %v126_v38 = vld [vmem:[%s3643_s3] sm:$0xf] }
  0x69   :  { %2235 = vmatpush1.bf16.msra.mxu0 %v3183_v60  ;;  %v539_v47 = vld [vmem:[#allocation10 + $0xb8] sm:$0xff]  ;;  %v3237_v48 = vpack.c.bf16 %v530_v43, %v526_v42  ;;  %v534_v50 = vld [vmem:[#allocation10 + $0x90] sm:$0xff] }
  0x6a   :  { %2237 = vmatprep.subr.bf16.mxu0 %v3186_v62  ;;  %347 = vmatpush1.bf16.msra.mxu1 %v2757_v2  ;;  %v3241_v49 = vpack.c.bf16 %v539_v47, %v535_v45  ;;  %v538_v51 = vld [vmem:[#allocation10 + $0xb0] sm:$0xff]  ;;  %v543_v53 = vld [vmem:[#allocation10 + $0xd8] sm:$0xff] }
  0x6b   :  { %405 = vmatprep.subr.bf16.mxu1 %v2761_v3  ;;  %v547_v54 = vld [vmem:[#allocation10 + $0xf8] sm:$0xff]  ;;  %v3244_v56 = vpack.c.bf16 %v538_v51, %v534_v50  ;;  %v542_v58 = vld [vmem:[#allocation10 + $0xd0] sm:$0xff] }
  0x6c   :  { %v3247_v57 = vpack.c.bf16 %v547_v54, %v543_v53  ;;  %v546_v59 = vld [vmem:[#allocation10 + $0xf0] sm:$0xff]  ;;  %v551_v61 = vld [vmem:[#allocation10 + $0x118] sm:$0xff] }
  0x6d   :  { %2239 = vmatpush1.bf16.msra.mxu0 %v3189_v4  ;;  %365 = vmatmul.mubr.bf16.vlgmr.msra.gmra.mrb[0].mxu1 %v3192_v5  ;;  %v555_v63 = vld [vmem:[#allocation10 + $0x138] sm:$0xff]  ;;  %v3251_v2 = vpack.c.bf16 %v546_v59, %v542_v58  ;;  %v574_v31 = vld [vmem:[#allocation10 + $0x1d0] sm:$0xff] }
  0x6e   :  { %2273 = vmatprep.subr.bf16.mxu0 %v3145_v6  ;;  %406 = vmatpush1.bf16.msra.mxu1 %v2759_v7  ;;  %v3255_v3 = vpack.c.bf16 %v555_v63, %v551_v61  ;;  %v554_v7 = vld [vmem:[#allocation10 + $0x130] sm:$0xff] }
  0x6f   :  { %374 = vmatprep.mubr.bf16.mxu1 %v3050_v0  ;;  %407 = vmatprep.subr.bf16.mxu1 %v2764_v8  ;;  %v559_v8 = vld [vmem:[#allocation10 + $0x158] sm:$0xff] }
  0x70   :  { %645 = vmatmul.mubr.f32.vlgmr.msra.gmra.mrb[0].mxu0 %v3647_v1 }
  0x71   :  { %2275 = vmatpush1.bf16.msra.mxu0 %v3147_v9  ;;  %819 = vmatprep.mubr.f32.mxu0 %v3647_v1 }
  0x72   :  { %2277 = vmatprep.subr.bf16.mxu0 %v3151_v15  ;;  %408 = vmatpush1.bf16.msra.mxu1 %v2762_v10  ;;  %v563_v10 = vld [vmem:[#allocation10 + $0x178] sm:$0xff] }
  0x73   :  { %409 = vmatprep.subr.bf16.mxu1 %v2768_v11 }
  0x75   :  { %2279 = vmatpush1.bf16.msra.mxu0 %v3153_v17  ;;  %375 = vmatmul.mubr.bf16.gmra.mrb[4].mxu1 %v3201_v12 }
  0x76   :  { %2281 = vmatprep.subr.bf16.mxu0 %v3156_v24  ;;  %410 = vmatpush1.bf16.msra.mxu1 %v2766_v13  ;;  %v558_v13 = vld [vmem:[#allocation10 + $0x150] sm:$0xff] }
  0x77   :  { %384 = vmatprep.mubr.bf16.mxu1 %v3050_v0  ;;  %411 = vmatprep.subr.bf16.mxu1 %v2771_v14  ;;  %v562_v14 = vld [vmem:[#allocation10 + $0x170] sm:$0xff] }
  0x79   :  { %2283 = vmatpush1.bf16.msra.mxu0 %v3159_v26 }
  0x7a   :  { %2285 = vmatprep.subr.bf16.mxu0 %v3162_v29  ;;  %412 = vmatpush1.bf16.msra.mxu1 %v2769_v16  ;;  %v567_v16 = vld [vmem:[#allocation10 + $0x198] sm:$0xff] }
  0x7b   :  { %413 = vmatprep.subr.bf16.mxu1 %v2775_v18  ;;  %v571_v18 = vld [vmem:[#allocation10 + $0x1b8] sm:$0xff] }
  0x7d   :  { %2287 = vmatpush1.bf16.msra.mxu0 %v3165_v36  ;;  %385 = vmatmul.mubr.bf16.gmra.mrb[8].mxu1 %v3209_v19 }
  0x7e   :  { %2289 = vmatprep.subr.bf16.mxu0 %v3168_v37  ;;  %414 = vmatpush1.bf16.msra.mxu1 %v2773_v20  ;;  %v3265_v20 = vpack.c.bf16 %v562_v14, %v558_v13 }
  0x7f   :  { %394 = vmatprep.mubr.bf16.mxu1 %v3050_v0  ;;  %415 = vmatprep.subr.bf16.mxu1 %v2778_v21  ;;  %v3269_v21 = vpack.c.bf16 %v571_v18, %v567_v16 }
  0x81   :  { %2291 = vmatpush1.bf16.msra.mxu0 %v3171_v44 }
  0x82   :  { %2293 = vmatprep.subr.bf16.mxu0 %v3174_v46  ;;  %416 = vmatpush1.bf16.msra.mxu1 %v2776_v22  ;;  %v566_v22 = vld [vmem:[#allocation10 + $0x190] sm:$0xff] }
  0x83   :  { %417 = vmatprep.subr.bf16.mxu1 %v2782_v23  ;;  %v570_v23 = vld [vmem:[#allocation10 + $0x1b0] sm:$0xff] }
  0x84   :  { %v3272_v30 = vpack.c.bf16 %v570_v23, %v566_v22 }
  0x85   :  { %2295 = vmatpush1.bf16.msra.mxu0 %v3177_v52  ;;  %395 = vmatmul.mubr.bf16.gmra.mrb[12].mxu1 %v3217_v25 }
  0x86   :  { %2297 = vmatprep.subr.bf16.mxu0 %v3180_v55  ;;  %418 = vmatpush1.bf16.msra.mxu1 %v2780_v27  ;;  %v575_v27 = vld [vmem:[#allocation10 + $0x1d8] sm:$0xff] }
  0x87   :  { %437 = vmatprep.mubr.bf16.mxu1 %v3050_v0  ;;  %419 = vmatprep.subr.bf16.mxu1 %v2785_v28  ;;  %v579_v28 = vld [vmem:[#allocation10 + $0x1f8] sm:$0xff] }
  0x89   :  { %2299 = vmatpush1.bf16.msra.mxu0 %v3183_v60 }
  0x8a   :  { %2301 = vmatprep.subr.bf16.mxu0 %v3186_v62  ;;  %420 = vmatpush1.bf16.msra.mxu1 %v2783_v32  ;;  %v578_v32 = vld [vmem:[#allocation10 + $0x1f0] sm:$0xff] }
  0x8b   :  { %2241 = vmatprep.subr.bf16.mxu1 %v3224_v33 }
  0x8d   :  { %2303 = vmatpush1.bf16.msra.mxu0 %v3189_v4  ;;  %438 = vmatmul.mubr.bf16.vlgmr.msra.gmra.mrb[16].mxu1 %v3192_v5  ;;  %v550_v5 = vld [vmem:[#allocation10 + $0x110] sm:$0xff] }
  0x8e   :  { %2337 = vmatprep.subr.bf16.mxu0 %v3145_v6  ;;  %2243 = vmatpush1.bf16.msra.mxu1 %v3228_v40  ;;  %v3258_v11 = vpack.c.bf16 %v554_v7, %v550_v5 }
  0x8f   :  { %447 = vmatprep.mubr.bf16.mxu1 %v3050_v0  ;;  %2245 = vmatprep.subr.bf16.mxu1 %v3231_v41 }
  0x92   :  { %2247 = vmatpush1.bf16.msra.mxu1 %v3237_v48 }
  0x93   :  { %2249 = vmatprep.subr.bf16.mxu1 %v3241_v49 }
  0x95   :  { %448 = vmatmul.mubr.bf16.gmra.mrb[20].mxu1 %v3201_v12  ;;  %v3261_v12 = vpack.c.bf16 %v563_v10, %v559_v8 }
  0x96   :  { %2251 = vmatpush1.bf16.msra.mxu1 %v3244_v56  ;;  %457 = vmatprep.mubr.bf16.mxu1 %v3050_v0 }
  0x97   :  { %2253 = vmatprep.subr.bf16.mxu1 %v3247_v57 }
  0x9a   :  { %2255 = vmatpush1.bf16.msra.mxu1 %v3251_v2 }
  0x9b   :  { %2257 = vmatprep.subr.bf16.mxu1 %v3255_v3 }
  0x9d   :  { %458 = vmatmul.mubr.bf16.gmra.mrb[24].mxu1 %v3209_v19  ;;  %v3275_v19 = vpack.c.bf16 %v579_v28, %v575_v27 }
  0x9e   :  { %2259 = vmatpush1.bf16.msra.mxu1 %v3258_v11  ;;  %467 = vmatprep.mubr.bf16.mxu1 %v3050_v0  ;;  %v3279_v0 = vpack.c.bf16 %v578_v32, %v574_v31 }
  0x9f   :  { %2261 = vmatprep.subr.bf16.mxu1 %v3261_v12 }
  0xa2   :  { %2263 = vmatpush1.bf16.msra.mxu1 %v3265_v20 }
  0xa3   :  { %2265 = vmatprep.subr.bf16.mxu1 %v3269_v21 }
  0xa5   :  { %468 = vmatmul.mubr.bf16.gmra.mrb[28].mxu1 %v3217_v25  ;;  %v128_v25 = vlaneseq }
  0xa6   :  { %2267 = vmatpush1.bf16.msra.mxu1 %v3272_v30  ;;  %715 = vmatprep.mubr.f32.mxu1 %v3647_v1 }
  0xa7   :  { %2269 = vmatprep.subr.bf16.mxu1 %v3275_v19  ;;  %v129_v34 = vshrl.u32 %v128_v25, 7 }
  0xa9   :  { %v130_v35 = vsub.s32 0, %v129_v34  ;;  %v134_v39 = vsub.s32 1, %v129_v34 }
  0xaa   :  { %2271 = vmatpush1.bf16.msra.mxu1 %v3279_v0 }
  0xab   :  { %2305 = vmatprep.subr.bf16.mxu1 %v3224_v33  ;;  %v131_v42 = vrot.slane %v126_v38, %v130_v35  ;;  %v135_v43 = vrot.slane %v126_v38, %v134_v39 }
  0xad   :  { %716 = vmatmul.mubr.f32.vlgmr.msra.gmra.mrb[32].mxu1 %v3647_v1 }
  0xae   :  { %2307 = vmatpush1.bf16.msra.mxu1 %v3228_v40  ;;  %890 = vmatprep.mubr.f32.mxu1 %v3647_v1 }
  0xaf   :  { %2309 = vmatprep.subr.bf16.mxu1 %v3231_v41 }
  0xb2   :  { %2311 = vmatpush1.bf16.msra.mxu1 %v3237_v48 }
  0xb3   :  { %2313 = vmatprep.subr.bf16.mxu1 %v3241_v49 }
  0xb6   :  { %2315 = vmatpush1.bf16.msra.mxu1 %v3244_v56 }
  0xb7   :  { %2317 = vmatprep.subr.bf16.mxu1 %v3247_v57 }
  0xba   :  { %2319 = vmatpush1.bf16.msra.mxu1 %v3251_v2 }
  0xbb   :  { %2321 = vmatprep.subr.bf16.mxu1 %v3255_v3 }
  0xbe   :  { %2323 = vmatpush1.bf16.msra.mxu1 %v3258_v11 }
  0xbf   :  { %2325 = vmatprep.subr.bf16.mxu1 %v3261_v12 }
  0xc2   :  { %2327 = vmatpush1.bf16.msra.mxu1 %v3265_v20 }
  0xc3   :  { %2329 = vmatprep.subr.bf16.mxu1 %v3269_v21 }
  0xc6   :  { %2331 = vmatpush1.bf16.msra.mxu1 %v3272_v30 }
  0xc7   :  { %2333 = vmatprep.subr.bf16.mxu1 %v3275_v19 }
  0xca   :  { %2335 = vmatpush1.bf16.msra.mxu1 %v3279_v0 }
  0xcb   :  { %2369 = vmatprep.subr.bf16.mxu1 %v3224_v33 }
 0x140   :  { %v366_v45 = vpop.f32.mrb[0].mxu1 }
 0x141   :  { %v367_v47 = vadd.f32 %v366_v45, %v131_v42  ;;  %v368_v50 = vpop.f32.mrb[1].mxu1 }
 0x142   :  { %v369_v51 = vadd.f32 %v368_v50, %v135_v43  ;;  %v370_v53 = vpop.f32.mrb[2].mxu1 }
 0x143   :  { %v646_v54 = vpop.f32.mrb[0].mxu0  ;;  %v3306_v58 = vadd.f32 %v370_v53, %v131_v42  ;;  %v372_v61 = vpop.f32.mrb[3].mxu1 }
 0x144   :  { %v722_v59 = vadd.f32 %v646_v54, %v367_v47  ;;  %v648_v63 = vpop.f32.mrb[1].mxu0  ;;  %v3308_v5 = vadd.f32 %v372_v61, %v135_v43 }
 0x145   :  { %v723_v7 = vadd.f32 %v648_v63, %v369_v51 }
 0x148   :  { %v376_v8 = vpop.f32.mrb[4].mxu1 }
 0x149   :  { %v3310_v10 = vadd.f32 %v376_v8, %v131_v42  ;;  %v378_v13 = vpop.f32.mrb[5].mxu1 }
 0x14a   :  { %v3312_v14 = vadd.f32 %v378_v13, %v135_v43  ;;  %v380_v16 = vpop.f32.mrb[6].mxu1  ;;  %v138_v13 = vsub.s32 2, %v129_v34 }
 0x14b   :  { %v3314_v18 = vadd.f32 %v380_v16, %v131_v42  ;;  %v382_v22 = vpop.f32.mrb[7].mxu1  ;;  %v142_v16 = vsub.s32 3, %v129_v34 }
 0x14c   :  { %v3316_v23 = vadd.f32 %v382_v22, %v135_v43 }
 0x14e   :  { %3649 = vst [vmem:[#allocation18_spill] sm:$0xff] %v3316_v23 }
 0x150   :  { %v386_v27 = vpop.f32.mrb[8].mxu1 }
 0x151   :  { %v3318_v28 = vadd.f32 %v386_v27, %v131_v42  ;;  %v388_v31 = vpop.f32.mrb[9].mxu1  ;;  %v139_v27 = vrot.slane %v126_v38, %v138_v13  ;;  %v2147_v13 = vmul.f32 -1.442695, %v723_v7 }
 0x152   :  { %v3320_v32 = vadd.f32 %v388_v31, %v135_v43  ;;  %v390_v25 = vpop.f32.mrb[10].mxu1 }
 0x153   :  { %3650 = vst [vmem:[#allocation19_spill] sm:$0xff] %v3318_v28  ;;  %v3322_v35 = vadd.f32 %v390_v25, %v131_v42  ;;  %v392_v39 = vpop.f32.mrb[11].mxu1  ;;  %v143_v25 = vrot.slane %v126_v38, %v142_v16  ;;  %v2146_v38 = vmul.f32 -1.442695, %v722_v59  ;;  %2794 = vpow2.f32 %v2147_v13 }
 0x154   :  { %3651 = vst [vmem:[#allocation20_spill] sm:$0xff] %v3320_v32  ;;  %v3324_v45 = vadd.f32 %v392_v39, %v135_v43 }
 0x155   :  { %3652 = vst [vmem:[#allocation21_spill] sm:$0xff] %v3322_v35  ;;  %2796 = vpow2.f32 %v2146_v38 }
 0x156   :  { %3653 = vst [vmem:[#allocation22_spill] sm:$0xff] %v3324_v45 }
 0x158   :  { %v396_v47 = vpop.f32.mrb[12].mxu1 }
 0x159   :  { %v3326_v50 = vadd.f32 %v396_v47, %v131_v42  ;;  %v398_v51 = vpop.f32.mrb[13].mxu1 }
 0x15a   :  { %v3328_v53 = vadd.f32 %v398_v51, %v135_v43  ;;  %v400_v54 = vpop.f32.mrb[14].mxu1 }
 0x15b   :  { %3654 = vst [vmem:[#allocation23_spill] sm:$0xff] %v3326_v50  ;;  %v3330_v61 = vadd.f32 %v400_v54, %v131_v42  ;;  %v402_v63 = vpop.f32.mrb[15].mxu1 }
 0x15c   :  { %3655 = vst [vmem:[#allocation24_spill] sm:$0xff] %v3328_v53  ;;  %v3332_v8 = vadd.f32 %v402_v63, %v135_v43 }
 0x15d   :  { %3656 = vst [vmem:[#allocation25_spill] sm:$0xff] %v3330_v61  ;;  %v2795_v13 = vpop.eup %2794 }
 0x15e   :  { %3657 = vst [vmem:[#allocation26_spill] sm:$0xff] %v3332_v8 }
 0x15f   :  { %v2797_v38 = vpop.eup %2796 }
 0x160   :  { %v439_v22 = vpop.f32.mrb[16].mxu1 }
 0x161   :  { %v441_v31 = vpop.f32.mrb[17].mxu1 }
 0x162   :  { %v443_v39 = vpop.f32.mrb[18].mxu1  ;;  %v442_v28 = vadd.f32 %v441_v31, %v143_v25 }
 0x163   :  { %v3334_v1 = vadd.f32 %v443_v39, %v139_v27  ;;  %v445_v47 = vpop.f32.mrb[19].mxu1 }
 0x164   :  { %v3336_v50 = vadd.f32 %v445_v47, %v143_v25 }
 0x168   :  { %v449_v51 = vpop.f32.mrb[20].mxu1 }
 0x169   :  { %v3338_v53 = vadd.f32 %v449_v51, %v139_v27  ;;  %v451_v42 = vpop.f32.mrb[21].mxu1 }
 0x16a   :  { %v3340_v54 = vadd.f32 %v451_v42, %v143_v25  ;;  %v453_v43 = vpop.f32.mrb[22].mxu1 }
 0x16b   :  { %v3342_v63 = vadd.f32 %v453_v43, %v139_v27  ;;  %v455_v34 = vpop.f32.mrb[23].mxu1 }
 0x16c   :  { %v3344_v8 = vadd.f32 %v455_v34, %v143_v25 }
 0x16e   :  { %3658 = vst [vmem:[#allocation27_spill] sm:$0xff] %v3344_v8 }
 0x170   :  { %v459_v16 = vpop.f32.mrb[24].mxu1 }
 0x171   :  { %v3346_v39 = vadd.f32 %v459_v16, %v139_v27  ;;  %v461_v47 = vpop.f32.mrb[25].mxu1 }
 0x172   :  { %v3348_v61 = vadd.f32 %v461_v47, %v143_v25  ;;  %v463_v51 = vpop.f32.mrb[26].mxu1 }
 0x173   :  { %3659 = vst [vmem:[#allocation28_spill] sm:$0xff] %v3346_v39  ;;  %v3350_v45 = vadd.f32 %v463_v51, %v139_v27  ;;  %v465_v42 = vpop.f32.mrb[27].mxu1  ;;  %v735_v51 = vadd.f32 1.0, %v2797_v38 }
 0x174   :  { %3660 = vst [vmem:[#allocation29_spill] sm:$0xff] %v3348_v61  ;;  %v3352_v35 = vadd.f32 %v465_v42, %v143_v25  ;;  %v736_v61 = vadd.f32 1.0, %v2795_v13 }
 0x175   :  { %3661 = vst [vmem:[#allocation30_spill] sm:$0xff] %v3350_v45  ;;  %v440_v45 = vadd.f32 %v439_v22, %v139_v27 }
 0x176   :  { %3662 = vst [vmem:[#allocation31_spill] sm:$0xff] %v3352_v35  ;;  %2798 = vrcp.f32 %v736_v61 }
 0x177   :  { %2800 = vrcp.f32 %v735_v51 }
 0x178   :  { %v469_v43 = vpop.f32.mrb[28].mxu1 }
 0x179   :  { %v3354_v32 = vadd.f32 %v469_v43, %v139_v27  ;;  %v471_v34 = vpop.f32.mrb[29].mxu1 }
 0x17a   :  { %v3356_v7 = vadd.f32 %v471_v34, %v143_v25  ;;  %v473_v59 = vpop.f32.mrb[30].mxu1 }
 0x17b   :  { %3663 = vst [vmem:[#allocation32_spill] sm:$0xff] %v3354_v32  ;;  %v3358_v16 = vadd.f32 %v473_v59, %v139_v27  ;;  %v475_v39 = vpop.f32.mrb[31].mxu1 }
 0x17c   :  { %3664 = vst [vmem:[#allocation33_spill] sm:$0xff] %v3356_v7  ;;  %v3360_v47 = vadd.f32 %v475_v39, %v143_v25 }
 0x17d   :  { %3665 = vst [vmem:[#allocation34_spill] sm:$0xff] %v3358_v16 }
 0x17e   :  { %3666 = vst [vmem:[#allocation35_spill] sm:$0xff] %v3360_v47 }
 0x180   :  { %v717_v42 = vpop.f32.mrb[32].mxu1  ;;  %v2799_v7 = vpop.eup %2798 }
 0x181   :  { %v724_v35 = vadd.f32 %v717_v42, %v440_v45  ;;  %v719_v8 = vpop.f32.mrb[33].mxu1  ;;  %v2801_v59 = vpop.eup %2800  ;;  %v745_v23 = vmul.f32 0.0, %v2799_v7 }
 0x182   :  { %v725_v43 = vadd.f32 %v719_v8, %v442_v28  ;;  %v3667_v28 = vmov 0.0  }
 0x183   :  { %v2148_v34 = vmul.f32 -1.442695, %v724_v35 }
 0x184   :  { %2802 = vtanh.f32 %v725_v43 }
 0x185   :  { %2804 = vpow2.f32 %v2148_v34 }
 0x18e   :  { %v2803_v16 = vpop.eup %2802 }
 0x18f   :  { %v2805_v32 = vpop.eup %2804  ;;  %v746_v39 = vmul.f32 %v2803_v16, %v2801_v59 }
 0x190   :  { %v737_v47 = vadd.f32 1.0, %v2805_v32 }
 0x191   :  { %v3362_v13 = vadd.f32 %v746_v39, %v745_v23 }
 0x192   :  { %2806 = vrcp.f32 %v737_v47 }
 0x193   :  { %2808 = vtanh.f32 %v3362_v13 }
 0x19c   :  { %v2807_v45 = vpop.eup %2806 }
 0x19d   :  { %v2809_v22 = vpop.eup %2808 }
 0x19e   :  { %v749_v61 = vmul.f32 %v2809_v22, %v2807_v45 }
 0x1a0   :  { %820 = vmatmul.mubr.f32.vlgmr.msra.gmra.mrb[2].mxu0 %v749_v61  ;;  %891 = vmatmul.mubr.f32.vlgmr.msra.gmra.mrb[34].mxu1 %v749_v61 }
 0x1a1   :  { %2339 = vmatpush1.bf16.msra.mxu0 %v3147_v9  ;;  %2371 = vmatpush1.bf16.msra.mxu1 %v3228_v40 }
 0x1a2   :  { %2341 = vmatprep.subr.bf16.mxu0 %v3151_v15  ;;  %2373 = vmatprep.subr.bf16.mxu1 %v3231_v41 }
 0x1a3   :  { %994 = vmatprep.mubr.f32.mxu0 %v3667_v28  ;;  %1065 = vmatprep.mubr.f32.mxu1 %v3667_v28 }
 0x1a5   :  { %2343 = vmatpush1.bf16.msra.mxu0 %v3153_v17  ;;  %2375 = vmatpush1.bf16.msra.mxu1 %v3237_v48 }
 0x1a6   :  { %2345 = vmatprep.subr.bf16.mxu0 %v3156_v24  ;;  %2377 = vmatprep.subr.bf16.mxu1 %v3241_v49 }
 0x1a9   :  { %2347 = vmatpush1.bf16.msra.mxu0 %v3159_v26  ;;  %2379 = vmatpush1.bf16.msra.mxu1 %v3244_v56 }
 0x1aa   :  { %2349 = vmatprep.subr.bf16.mxu0 %v3162_v29  ;;  %2381 = vmatprep.subr.bf16.mxu1 %v3247_v57 }
 0x1ad   :  { %2351 = vmatpush1.bf16.msra.mxu0 %v3165_v36  ;;  %2383 = vmatpush1.bf16.msra.mxu1 %v3251_v2 }
 0x1ae   :  { %2353 = vmatprep.subr.bf16.mxu0 %v3168_v37  ;;  %2385 = vmatprep.subr.bf16.mxu1 %v3255_v3 }
 0x1b1   :  { %2355 = vmatpush1.bf16.msra.mxu0 %v3171_v44  ;;  %2387 = vmatpush1.bf16.msra.mxu1 %v3258_v11 }
 0x1b2   :  { %2357 = vmatprep.subr.bf16.mxu0 %v3174_v46  ;;  %2389 = vmatprep.subr.bf16.mxu1 %v3261_v12 }
 0x1b5   :  { %2359 = vmatpush1.bf16.msra.mxu0 %v3177_v52  ;;  %2391 = vmatpush1.bf16.msra.mxu1 %v3265_v20 }
 0x1b6   :  { %2361 = vmatprep.subr.bf16.mxu0 %v3180_v55  ;;  %2393 = vmatprep.subr.bf16.mxu1 %v3269_v21 }
 0x1b9   :  { %2363 = vmatpush1.bf16.msra.mxu0 %v3183_v60  ;;  %2395 = vmatpush1.bf16.msra.mxu1 %v3272_v30 }
 0x1ba   :  { %2365 = vmatprep.subr.bf16.mxu0 %v3186_v62  ;;  %2397 = vmatprep.subr.bf16.mxu1 %v3275_v19 }
 0x1bd   :  { %2367 = vmatpush1.bf16.msra.mxu0 %v3189_v4  ;;  %2399 = vmatpush1.bf16.msra.mxu1 %v3279_v0 }
 0x1be   :  { %2401 = vmatprep.subr.bf16.mxu0 %v3145_v6  ;;  %2433 = vmatprep.subr.bf16.mxu1 %v3224_v33 }
 0x273   :  { %v821_v23 = vpop.f32.mrb[2].mxu0  ;;  %v892_v32 = vpop.f32.mrb[34].mxu1 }
 0x274   :  { %v897_v35 = vadd.f32 %v821_v23, %v3306_v58  ;;  %v899_v8 = vadd.f32 %v892_v32, %v3334_v1  ;;  %v823_v27 = vpop.f32.mrb[3].mxu0  ;;  %v894_v31 = vpop.f32.mrb[35].mxu1 }
 0x275   :  { %v898_v25 = vadd.f32 %v823_v27, %v3308_v5  ;;  %v900_v7 = vadd.f32 %v894_v31, %v3336_v50 }
 0x276   :  { %v2149_v16 = vmul.f32 -1.442695, %v897_v35  ;;  %v2151_v47 = vmul.f32 -1.442695, %v899_v8 }
 0x277   :  { %v2150_v38 = vmul.f32 -1.442695, %v898_v25 }
 0x278   :  { %2810 = vpow2.f32 %v2149_v16 }
 0x279   :  { %2812 = vpow2.f32 %v2150_v38 }
 0x27a   :  { %2814 = vtanh.f32 %v900_v7 }
 0x27b   :  { %2816 = vpow2.f32 %v2151_v47 }
 0x282   :  { %v2811_v51 = vpop.eup %2810 }
 0x283   :  { %v910_v42 = vadd.f32 1.0, %v2811_v51  ;;  %v2813_v43 = vpop.eup %2812 }
 0x284   :  { %v911_v58 = vadd.f32 1.0, %v2813_v43  ;;  %v2815_v1 = vpop.eup %2814 }
 0x285   :  { %2818 = vrcp.f32 %v910_v42  ;;  %v2817_v34 = vpop.eup %2816 }
 0x286   :  { %2820 = vrcp.f32 %v911_v58  ;;  %v912_v45 = vadd.f32 1.0, %v2817_v34 }
 0x288   :  { %2822 = vrcp.f32 %v912_v45 }
 0x28f   :  { %v2819_v59 = vpop.eup %2818 }
 0x290   :  { %v921_v39 = vmul.f32 %v2819_v59, %v2815_v1  ;;  %v2821_v5 = vpop.eup %2820 }
 0x291   :  { %v920_v50 = vmul.f32 %v2821_v5, %v3362_v13 }
 0x292   :  { %v2823_v61 = vpop.eup %2822 }
 0x293   :  { %v3404_v22 = vadd.f32 %v921_v39, %v920_v50 }
 0x295   :  { %2824 = vtanh.f32 %v3404_v22 }
 0x29f   :  { %v2825_v23 = vpop.eup %2824 }
 0x2a0   :  { %v924_v32 = vmul.f32 %v2825_v23, %v2823_v61 }
 0x2a2   :  { %995 = vmatmul.mubr.f32.vlgmr.msra.gmra.mrb[4].mxu0 %v924_v32  ;;  %1066 = vmatmul.mubr.f32.vlgmr.msra.gmra.mrb[36].mxu1 %v924_v32 }
 0x2a3   :  { %2403 = vmatpush1.bf16.msra.mxu0 %v3147_v9  ;;  %2435 = vmatpush1.bf16.msra.mxu1 %v3228_v40 }
 0x2a4   :  { %2405 = vmatprep.subr.bf16.mxu0 %v3151_v15  ;;  %2437 = vmatprep.subr.bf16.mxu1 %v3231_v41 }
 0x2a5   :  { %1169 = vmatprep.mubr.f32.mxu0 %v3667_v28  ;;  %1240 = vmatprep.mubr.f32.mxu1 %v3667_v28 }
 0x2a7   :  { %2407 = vmatpush1.bf16.msra.mxu0 %v3153_v17  ;;  %2439 = vmatpush1.bf16.msra.mxu1 %v3237_v48 }
 0x2a8   :  { %2409 = vmatprep.subr.bf16.mxu0 %v3156_v24  ;;  %2441 = vmatprep.subr.bf16.mxu1 %v3241_v49 }
 0x2ab   :  { %2411 = vmatpush1.bf16.msra.mxu0 %v3159_v26  ;;  %2443 = vmatpush1.bf16.msra.mxu1 %v3244_v56 }
 0x2ac   :  { %2413 = vmatprep.subr.bf16.mxu0 %v3162_v29  ;;  %2445 = vmatprep.subr.bf16.mxu1 %v3247_v57 }
 0x2af   :  { %2415 = vmatpush1.bf16.msra.mxu0 %v3165_v36  ;;  %2447 = vmatpush1.bf16.msra.mxu1 %v3251_v2 }
 0x2b0   :  { %2417 = vmatprep.subr.bf16.mxu0 %v3168_v37  ;;  %2449 = vmatprep.subr.bf16.mxu1 %v3255_v3 }
 0x2b3   :  { %2419 = vmatpush1.bf16.msra.mxu0 %v3171_v44  ;;  %2451 = vmatpush1.bf16.msra.mxu1 %v3258_v11 }
 0x2b4   :  { %2421 = vmatprep.subr.bf16.mxu0 %v3174_v46  ;;  %2453 = vmatprep.subr.bf16.mxu1 %v3261_v12 }
 0x2b7   :  { %2423 = vmatpush1.bf16.msra.mxu0 %v3177_v52  ;;  %2455 = vmatpush1.bf16.msra.mxu1 %v3265_v20 }
 0x2b8   :  { %2425 = vmatprep.subr.bf16.mxu0 %v3180_v55  ;;  %2457 = vmatprep.subr.bf16.mxu1 %v3269_v21 }
 0x2bb   :  { %2427 = vmatpush1.bf16.msra.mxu0 %v3183_v60  ;;  %2459 = vmatpush1.bf16.msra.mxu1 %v3272_v30 }
 0x2bc   :  { %2429 = vmatprep.subr.bf16.mxu0 %v3186_v62  ;;  %2461 = vmatprep.subr.bf16.mxu1 %v3275_v19 }
 0x2bf   :  { %2431 = vmatpush1.bf16.msra.mxu0 %v3189_v4  ;;  %2463 = vmatpush1.bf16.msra.mxu1 %v3279_v0 }
 0x2c0   :  { %2465 = vmatprep.subr.bf16.mxu0 %v3145_v6  ;;  %2497 = vmatprep.subr.bf16.mxu1 %v3224_v33 }
 0x375   :  { %v996_v13 = vpop.f32.mrb[4].mxu0  ;;  %v1067_v35 = vpop.f32.mrb[36].mxu1 }
 0x376   :  { %v1072_v8 = vadd.f32 %v996_v13, %v3310_v10  ;;  %v1074_v27 = vadd.f32 %v1067_v35, %v3338_v53  ;;  %v998_v31 = vpop.f32.mrb[5].mxu0  ;;  %v1069_v25 = vpop.f32.mrb[37].mxu1 }
 0x377   :  { %v1073_v7 = vadd.f32 %v998_v31, %v3312_v14  ;;  %v1075_v16 = vadd.f32 %v1069_v25, %v3340_v54  ;;  %v3669_v25 = vld [vmem:[#allocation27_spill] sm:$0xff] }
 0x378   :  { %v2152_v38 = vmul.f32 -1.442695, %v1072_v8  ;;  %v2154_v51 = vmul.f32 -1.442695, %v1074_v27  ;;  %v3668_v27 = vld [vmem:[#allocation18_spill] sm:$0xff] }
 0x379   :  { %v2153_v47 = vmul.f32 -1.442695, %v1073_v7 }
 0x37a   :  { %2826 = vpow2.f32 %v2152_v38 }
 0x37b   :  { %2828 = vpow2.f32 %v2153_v47 }
 0x37c   :  { %2830 = vtanh.f32 %v1075_v16 }
 0x37d   :  { %2832 = vpow2.f32 %v2154_v51 }
 0x384   :  { %v2827_v42 = vpop.eup %2826 }
 0x385   :  { %v1085_v43 = vadd.f32 1.0, %v2827_v42  ;;  %v2829_v58 = vpop.eup %2828 }
 0x386   :  { %v1086_v10 = vadd.f32 1.0, %v2829_v58  ;;  %v2831_v53 = vpop.eup %2830 }
 0x387   :  { %2834 = vrcp.f32 %v1085_v43  ;;  %v2833_v1 = vpop.eup %2832 }
 0x388   :  { %2836 = vrcp.f32 %v1086_v10  ;;  %v1087_v39 = vadd.f32 1.0, %v2833_v1 }
 0x38a   :  { %2838 = vrcp.f32 %v1087_v39 }
 0x391   :  { %v2835_v34 = vpop.eup %2834 }
 0x392   :  { %v1096_v59 = vmul.f32 %v2835_v34, %v2831_v53  ;;  %v2837_v14 = vpop.eup %2836 }
 0x393   :  { %v1095_v54 = vmul.f32 %v2837_v14, %v3404_v22 }
 0x394   :  { %v2839_v45 = vpop.eup %2838 }
 0x395   :  { %v3446_v5 = vadd.f32 %v1096_v59, %v1095_v54 }
 0x397   :  { %2840 = vtanh.f32 %v3446_v5 }
 0x3a1   :  { %v2841_v50 = vpop.eup %2840 }
 0x3a2   :  { %v1099_v61 = vmul.f32 %v2841_v50, %v2839_v45 }
 0x3a4   :  { %1170 = vmatmul.mubr.f32.vlgmr.msra.gmra.mrb[6].mxu0 %v1099_v61  ;;  %1241 = vmatmul.mubr.f32.vlgmr.msra.gmra.mrb[38].mxu1 %v1099_v61  ;;  %v3670_v61 = vld [vmem:[#allocation19_spill] sm:$0xff] }
 0x3a5   :  { %2467 = vmatpush1.bf16.msra.mxu0 %v3147_v9  ;;  %2499 = vmatpush1.bf16.msra.mxu1 %v3228_v40 }
 0x3a6   :  { %2469 = vmatprep.subr.bf16.mxu0 %v3151_v15  ;;  %2501 = vmatprep.subr.bf16.mxu1 %v3231_v41 }
 0x3a7   :  { %1344 = vmatprep.mubr.f32.mxu0 %v3667_v28  ;;  %1415 = vmatprep.mubr.f32.mxu1 %v3667_v28 }
 0x3a9   :  { %2471 = vmatpush1.bf16.msra.mxu0 %v3153_v17  ;;  %2503 = vmatpush1.bf16.msra.mxu1 %v3237_v48 }
 0x3aa   :  { %2473 = vmatprep.subr.bf16.mxu0 %v3156_v24  ;;  %2505 = vmatprep.subr.bf16.mxu1 %v3241_v49 }
 0x3ad   :  { %2475 = vmatpush1.bf16.msra.mxu0 %v3159_v26  ;;  %2507 = vmatpush1.bf16.msra.mxu1 %v3244_v56 }
 0x3ae   :  { %2477 = vmatprep.subr.bf16.mxu0 %v3162_v29  ;;  %2509 = vmatprep.subr.bf16.mxu1 %v3247_v57 }
 0x3b1   :  { %2479 = vmatpush1.bf16.msra.mxu0 %v3165_v36  ;;  %2511 = vmatpush1.bf16.msra.mxu1 %v3251_v2 }
 0x3b2   :  { %2481 = vmatprep.subr.bf16.mxu0 %v3168_v37  ;;  %2513 = vmatprep.subr.bf16.mxu1 %v3255_v3 }
 0x3b5   :  { %2483 = vmatpush1.bf16.msra.mxu0 %v3171_v44  ;;  %2515 = vmatpush1.bf16.msra.mxu1 %v3258_v11 }
 0x3b6   :  { %2485 = vmatprep.subr.bf16.mxu0 %v3174_v46  ;;  %2517 = vmatprep.subr.bf16.mxu1 %v3261_v12 }
 0x3b9   :  { %2487 = vmatpush1.bf16.msra.mxu0 %v3177_v52  ;;  %2519 = vmatpush1.bf16.msra.mxu1 %v3265_v20 }
 0x3ba   :  { %2489 = vmatprep.subr.bf16.mxu0 %v3180_v55  ;;  %2521 = vmatprep.subr.bf16.mxu1 %v3269_v21 }
 0x3bd   :  { %2491 = vmatpush1.bf16.msra.mxu0 %v3183_v60  ;;  %2523 = vmatpush1.bf16.msra.mxu1 %v3272_v30 }
 0x3be   :  { %2493 = vmatprep.subr.bf16.mxu0 %v3186_v62  ;;  %2525 = vmatprep.subr.bf16.mxu1 %v3275_v19 }
 0x3c1   :  { %2495 = vmatpush1.bf16.msra.mxu0 %v3189_v4  ;;  %2527 = vmatpush1.bf16.msra.mxu1 %v3279_v0 }
 0x3c2   :  { %2529 = vmatprep.subr.bf16.mxu0 %v3145_v6  ;;  %2561 = vmatprep.subr.bf16.mxu1 %v3224_v33 }
 0x477   :  { %v1171_v22 = vpop.f32.mrb[6].mxu0  ;;  %v1242_v23 = vpop.f32.mrb[38].mxu1 }
 0x478   :  { %v1247_v32 = vadd.f32 %v1171_v22, %v3314_v18  ;;  %v1249_v13 = vadd.f32 %v1242_v23, %v3342_v63  ;;  %v1173_v35 = vpop.f32.mrb[7].mxu0  ;;  %v1244_v8 = vpop.f32.mrb[39].mxu1  ;;  %v3671_v23 = vld [vmem:[#allocation28_spill] sm:$0xff] }
 0x479   :  { %v1248_v31 = vadd.f32 %v1173_v35, %v3668_v27  ;;  %v1250_v7 = vadd.f32 %v1244_v8, %v3669_v25  ;;  %v3672_v8 = vld [vmem:[#allocation20_spill] sm:$0xff] }
 0x47a   :  { %v2155_v16 = vmul.f32 -1.442695, %v1247_v32  ;;  %v2157_v47 = vmul.f32 -1.442695, %v1249_v13 }
 0x47b   :  { %v2156_v38 = vmul.f32 -1.442695, %v1248_v31  ;;  %v3673_v31 = vld [vmem:[#allocation29_spill] sm:$0xff] }
 0x47c   :  { %2842 = vpow2.f32 %v2155_v16 }
 0x47d   :  { %2844 = vpow2.f32 %v2156_v38 }
 0x47e   :  { %2846 = vtanh.f32 %v1250_v7 }
 0x47f   :  { %2848 = vpow2.f32 %v2157_v47 }
 0x486   :  { %v2843_v51 = vpop.eup %2842 }
 0x487   :  { %v1260_v42 = vadd.f32 1.0, %v2843_v51  ;;  %v2845_v43 = vpop.eup %2844 }
 0x488   :  { %v1261_v18 = vadd.f32 1.0, %v2845_v43  ;;  %v2847_v63 = vpop.eup %2846 }
 0x489   :  { %2850 = vrcp.f32 %v1260_v42  ;;  %v2849_v58 = vpop.eup %2848 }
 0x48a   :  { %2852 = vrcp.f32 %v1261_v18  ;;  %v1262_v34 = vadd.f32 1.0, %v2849_v58 }
 0x48c   :  { %2854 = vrcp.f32 %v1262_v34 }
 0x493   :  { %v2851_v10 = vpop.eup %2850 }
 0x494   :  { %v1271_v53 = vmul.f32 %v2851_v10, %v2847_v63  ;;  %v2853_v1 = vpop.eup %2852 }
 0x495   :  { %v1270_v59 = vmul.f32 %v2853_v1, %v3446_v5 }
 0x496   :  { %v2855_v39 = vpop.eup %2854 }
 0x497   :  { %v3488_v14 = vadd.f32 %v1271_v53, %v1270_v59 }
 0x499   :  { %2856 = vtanh.f32 %v3488_v14 }
 0x4a3   :  { %v2857_v54 = vpop.eup %2856 }
 0x4a4   :  { %v1274_v45 = vmul.f32 %v2857_v54, %v2855_v39 }
 0x4a6   :  { %1345 = vmatmul.mubr.f32.vlgmr.msra.gmra.mrb[8].mxu0 %v1274_v45  ;;  %1416 = vmatmul.mubr.f32.vlgmr.msra.gmra.mrb[40].mxu1 %v1274_v45 }
 0x4a7   :  { %2531 = vmatpush1.bf16.msra.mxu0 %v3147_v9  ;;  %2563 = vmatpush1.bf16.msra.mxu1 %v3228_v40 }
 0x4a8   :  { %2533 = vmatprep.subr.bf16.mxu0 %v3151_v15  ;;  %2565 = vmatprep.subr.bf16.mxu1 %v3231_v41 }
 0x4a9   :  { %1519 = vmatprep.mubr.f32.mxu0 %v3667_v28  ;;  %1590 = vmatprep.mubr.f32.mxu1 %v3667_v28 }
 0x4ab   :  { %2535 = vmatpush1.bf16.msra.mxu0 %v3153_v17  ;;  %2567 = vmatpush1.bf16.msra.mxu1 %v3237_v48 }
 0x4ac   :  { %2537 = vmatprep.subr.bf16.mxu0 %v3156_v24  ;;  %2569 = vmatprep.subr.bf16.mxu1 %v3241_v49 }
 0x4af   :  { %2539 = vmatpush1.bf16.msra.mxu0 %v3159_v26  ;;  %2571 = vmatpush1.bf16.msra.mxu1 %v3244_v56 }
 0x4b0   :  { %2541 = vmatprep.subr.bf16.mxu0 %v3162_v29  ;;  %2573 = vmatprep.subr.bf16.mxu1 %v3247_v57 }
 0x4b3   :  { %2543 = vmatpush1.bf16.msra.mxu0 %v3165_v36  ;;  %2575 = vmatpush1.bf16.msra.mxu1 %v3251_v2 }
 0x4b4   :  { %2545 = vmatprep.subr.bf16.mxu0 %v3168_v37  ;;  %2577 = vmatprep.subr.bf16.mxu1 %v3255_v3 }
 0x4b7   :  { %2547 = vmatpush1.bf16.msra.mxu0 %v3171_v44  ;;  %2579 = vmatpush1.bf16.msra.mxu1 %v3258_v11 }
 0x4b8   :  { %2549 = vmatprep.subr.bf16.mxu0 %v3174_v46  ;;  %2581 = vmatprep.subr.bf16.mxu1 %v3261_v12 }
 0x4bb   :  { %2551 = vmatpush1.bf16.msra.mxu0 %v3177_v52  ;;  %2583 = vmatpush1.bf16.msra.mxu1 %v3265_v20 }
 0x4bc   :  { %2553 = vmatprep.subr.bf16.mxu0 %v3180_v55  ;;  %2585 = vmatprep.subr.bf16.mxu1 %v3269_v21 }
 0x4bf   :  { %2555 = vmatpush1.bf16.msra.mxu0 %v3183_v60  ;;  %2587 = vmatpush1.bf16.msra.mxu1 %v3272_v30 }
 0x4c0   :  { %2557 = vmatprep.subr.bf16.mxu0 %v3186_v62  ;;  %2589 = vmatprep.subr.bf16.mxu1 %v3275_v19 }
 0x4c3   :  { %2559 = vmatpush1.bf16.msra.mxu0 %v3189_v4  ;;  %2591 = vmatpush1.bf16.msra.mxu1 %v3279_v0 }
 0x4c4   :  { %2593 = vmatprep.subr.bf16.mxu0 %v3145_v6  ;;  %2625 = vmatprep.subr.bf16.mxu1 %v3224_v33 }
 0x579   :  { %v1346_v5 = vpop.f32.mrb[8].mxu0  ;;  %v1417_v50 = vpop.f32.mrb[40].mxu1 }
 0x57a   :  { %v1422_v22 = vadd.f32 %v1346_v5, %v3670_v61  ;;  %v1424_v32 = vadd.f32 %v1417_v50, %v3671_v23  ;;  %v1348_v13 = vpop.f32.mrb[9].mxu0  ;;  %v1419_v35 = vpop.f32.mrb[41].mxu1  ;;  %v3674_v50 = vld [vmem:[#allocation21_spill] sm:$0xff] }
 0x57b   :  { %v1423_v27 = vadd.f32 %v1348_v13, %v3672_v8  ;;  %v1425_v25 = vadd.f32 %v1419_v35, %v3673_v31  ;;  %v3676_v35 = vld [vmem:[#allocation22_spill] sm:$0xff] }
 0x57c   :  { %v2158_v7 = vmul.f32 -1.442695, %v1422_v22  ;;  %v2160_v38 = vmul.f32 -1.442695, %v1424_v32  ;;  %v3675_v22 = vld [vmem:[#allocation30_spill] sm:$0xff] }
 0x57d   :  { %v2159_v16 = vmul.f32 -1.442695, %v1423_v27  ;;  %v3677_v27 = vld [vmem:[#allocation31_spill] sm:$0xff] }
 0x57e   :  { %2858 = vpow2.f32 %v2158_v7 }
 0x57f   :  { %2860 = vpow2.f32 %v2159_v16 }
 0x580   :  { %2862 = vtanh.f32 %v1425_v25 }
 0x581   :  { %2864 = vpow2.f32 %v2160_v38 }
 0x588   :  { %v2859_v47 = vpop.eup %2858 }
 0x589   :  { %v1435_v51 = vadd.f32 1.0, %v2859_v47  ;;  %v2861_v42 = vpop.eup %2860 }
 0x58a   :  { %v1436_v43 = vadd.f32 1.0, %v2861_v42  ;;  %v2863_v18 = vpop.eup %2862 }
 0x58b   :  { %2866 = vrcp.f32 %v1435_v51  ;;  %v2865_v63 = vpop.eup %2864 }
 0x58c   :  { %2868 = vrcp.f32 %v1436_v43  ;;  %v1437_v1 = vadd.f32 1.0, %v2865_v63 }
 0x58e   :  { %2870 = vrcp.f32 %v1437_v1 }
 0x595   :  { %v2867_v58 = vpop.eup %2866 }
 0x596   :  { %v1446_v10 = vmul.f32 %v2867_v58, %v2863_v18  ;;  %v2869_v53 = vpop.eup %2868 }
 0x597   :  { %v1445_v34 = vmul.f32 %v2869_v53, %v3488_v14 }
 0x598   :  { %v2871_v39 = vpop.eup %2870 }
 0x599   :  { %v3530_v59 = vadd.f32 %v1446_v10, %v1445_v34 }
 0x59b   :  { %2872 = vtanh.f32 %v3530_v59 }
 0x5a5   :  { %v2873_v54 = vpop.eup %2872 }
 0x5a6   :  { %v1449_v45 = vmul.f32 %v2873_v54, %v2871_v39  ;;  %v2787_v54 = vld [vmem:[#allocation11 + $0x8] sm:$0xff]  }
 0x5a8   :  { %1520 = vmatmul.mubr.f32.vlgmr.msra.gmra.mrb[10].mxu0 %v1449_v45  ;;  %1591 = vmatmul.mubr.f32.vlgmr.msra.gmra.mrb[42].mxu1 %v1449_v45  ;;  %v2788_v45 = vld [vmem:[#allocation11 + $0x10] sm:$0xff]  }
 0x5a9   :  { %2595 = vmatpush1.bf16.msra.mxu0 %v3147_v9  ;;  %2627 = vmatpush1.bf16.msra.mxu1 %v3228_v40 }
 0x5aa   :  { %2597 = vmatprep.subr.bf16.mxu0 %v3151_v15  ;;  %2629 = vmatprep.subr.bf16.mxu1 %v3231_v41 }
 0x5ab   :  { %1694 = vmatprep.mubr.f32.mxu0 %v3667_v28  ;;  %1765 = vmatprep.mubr.f32.mxu1 %v3667_v28 }
 0x5ad   :  { %2599 = vmatpush1.bf16.msra.mxu0 %v3153_v17  ;;  %2631 = vmatpush1.bf16.msra.mxu1 %v3237_v48 }
 0x5ae   :  { %2601 = vmatprep.subr.bf16.mxu0 %v3156_v24  ;;  %2633 = vmatprep.subr.bf16.mxu1 %v3241_v49 }
 0x5b1   :  { %2603 = vmatpush1.bf16.msra.mxu0 %v3159_v26  ;;  %2635 = vmatpush1.bf16.msra.mxu1 %v3244_v56 }
 0x5b2   :  { %2605 = vmatprep.subr.bf16.mxu0 %v3162_v29  ;;  %2637 = vmatprep.subr.bf16.mxu1 %v3247_v57 }
 0x5b5   :  { %2607 = vmatpush1.bf16.msra.mxu0 %v3165_v36  ;;  %2639 = vmatpush1.bf16.msra.mxu1 %v3251_v2 }
 0x5b6   :  { %2609 = vmatprep.subr.bf16.mxu0 %v3168_v37  ;;  %2641 = vmatprep.subr.bf16.mxu1 %v3255_v3 }
 0x5b9   :  { %2611 = vmatpush1.bf16.msra.mxu0 %v3171_v44  ;;  %2643 = vmatpush1.bf16.msra.mxu1 %v3258_v11 }
 0x5ba   :  { %2613 = vmatprep.subr.bf16.mxu0 %v3174_v46  ;;  %2645 = vmatprep.subr.bf16.mxu1 %v3261_v12 }
 0x5bd   :  { %2615 = vmatpush1.bf16.msra.mxu0 %v3177_v52  ;;  %2647 = vmatpush1.bf16.msra.mxu1 %v3265_v20 }
 0x5be   :  { %2617 = vmatprep.subr.bf16.mxu0 %v3180_v55  ;;  %2649 = vmatprep.subr.bf16.mxu1 %v3269_v21 }
 0x5c1   :  { %2619 = vmatpush1.bf16.msra.mxu0 %v3183_v60  ;;  %2651 = vmatpush1.bf16.msra.mxu1 %v3272_v30 }
 0x5c2   :  { %2621 = vmatprep.subr.bf16.mxu0 %v3186_v62  ;;  %2653 = vmatprep.subr.bf16.mxu1 %v3275_v19 }
 0x5c5   :  { %2623 = vmatpush1.bf16.msra.mxu0 %v3189_v4  ;;  %2655 = vmatpush1.bf16.msra.mxu1 %v3279_v0 }
 0x5c6   :  { %2657 = vmatprep.subr.bf16.mxu0 %v3145_v6  ;;  %2689 = vmatprep.subr.bf16.mxu1 %v3224_v33 }
 0x67b   :  { %v1521_v14 = vpop.f32.mrb[10].mxu0  ;;  %v1592_v5 = vpop.f32.mrb[42].mxu1 }
 0x67c   :  { %v1597_v61 = vadd.f32 %v1521_v14, %v3674_v50  ;;  %v1599_v23 = vadd.f32 %v1592_v5, %v3675_v22  ;;  %v1523_v32 = vpop.f32.mrb[11].mxu0  ;;  %v1594_v13 = vpop.f32.mrb[43].mxu1  ;;  %v2789_v14 = vld [vmem:[#allocation11 + $0x18] sm:$0xff]   ;;  %v2790_v5 = vld [vmem:[#allocation11 + $0x20] sm:$0xff]   ;;  %v2791_v50 = vld [vmem:[#allocation11 + $0x28] sm:$0xff]  }
 0x67d   :  { %v1598_v8 = vadd.f32 %v1523_v32, %v3676_v35  ;;  %v1600_v31 = vadd.f32 %v1594_v13, %v3677_v27  ;;  %v2793_v22 = vld [vmem:[#allocation11 + $0x38] sm:$0xff]   ;;  %v3682_v13 = vld [vmem:[#allocation25_spill] sm:$0xff] }
 0x67e   :  { %v2161_v25 = vmul.f32 -1.442695, %v1597_v61  ;;  %v2163_v16 = vmul.f32 -1.442695, %v1599_v23  ;;  %v2792_v61 = vld [vmem:[#allocation11 + $0x30] sm:$0xff]  }
 0x67f   :  { %v2162_v7 = vmul.f32 -1.442695, %v1598_v8  ;;  %v3683_v8 = vld [vmem:[#allocation34_spill] sm:$0xff] }
 0x680   :  { %2874 = vpow2.f32 %v2161_v25 }
 0x681   :  { %2876 = vpow2.f32 %v2162_v7  ;;  %v3684_v7 = vld [vmem:[#allocation26_spill] sm:$0xff] }
 0x682   :  { %2878 = vtanh.f32 %v1600_v31 }
 0x683   :  { %2880 = vpow2.f32 %v2163_v16 }
 0x68a   :  { %v2875_v6 = vpop.eup %2874 }
 0x68b   :  { %v1610_v38 = vadd.f32 1.0, %v2875_v6  ;;  %v2877_v33 = vpop.eup %2876  ;;  %v3685_v6 = vld [vmem:[#allocation35_spill] sm:$0xff] }
 0x68c   :  { %v1611_v47 = vadd.f32 1.0, %v2877_v33  ;;  %v2879_v51 = vpop.eup %2878 }
 0x68d   :  { %2882 = vrcp.f32 %v1610_v38  ;;  %v2881_v42 = vpop.eup %2880 }
 0x68e   :  { %2884 = vrcp.f32 %v1611_v47  ;;  %v1612_v58 = vadd.f32 1.0, %v2881_v42 }
 0x690   :  { %2886 = vrcp.f32 %v1612_v58 }
 0x697   :  { %v2883_v43 = vpop.eup %2882 }
 0x698   :  { %v1621_v18 = vmul.f32 %v2883_v43, %v2879_v51  ;;  %v2885_v63 = vpop.eup %2884 }
 0x699   :  { %v1620_v10 = vmul.f32 %v2885_v63, %v3530_v59  ;;  %v2786_v59 = vld [vmem:[#allocation11] sm:$0xff]  }
 0x69a   :  { %v2887_v1 = vpop.eup %2886 }
 0x69b   :  { %v3572_v53 = vadd.f32 %v1621_v18, %v1620_v10 }
 0x69d   :  { %2888 = vtanh.f32 %v3572_v53 }
 0x6a7   :  { %v2889_v34 = vpop.eup %2888 }
 0x6a8   :  { %v1624_v39 = vmul.f32 %v2889_v34, %v2887_v1 }
 0x6aa   :  { %1695 = vmatmul.mubr.f32.vlgmr.msra.gmra.mrb[12].mxu0 %v1624_v39  ;;  %1766 = vmatmul.mubr.f32.vlgmr.msra.gmra.mrb[44].mxu1 %v1624_v39 }
 0x6ab   :  { %2659 = vmatpush1.bf16.msra.mxu0 %v3147_v9  ;;  %2691 = vmatpush1.bf16.msra.mxu1 %v3228_v40 }
 0x6ac   :  { %2661 = vmatprep.subr.bf16.mxu0 %v3151_v15  ;;  %2693 = vmatprep.subr.bf16.mxu1 %v3231_v41 }
 0x6ad   :  { %1869 = vmatprep.mubr.f32.mxu0 %v3667_v28  ;;  %1940 = vmatprep.mubr.f32.mxu1 %v3667_v28 }
 0x6af   :  { %2663 = vmatpush1.bf16.msra.mxu0 %v3153_v17  ;;  %2695 = vmatpush1.bf16.msra.mxu1 %v3237_v48  ;;  %v3678_v17 = vld [vmem:[#allocation23_spill] sm:$0xff] }
 0x6b0   :  { %2665 = vmatprep.subr.bf16.mxu0 %v3156_v24  ;;  %2697 = vmatprep.subr.bf16.mxu1 %v3241_v49 }
 0x6b3   :  { %2667 = vmatpush1.bf16.msra.mxu0 %v3159_v26  ;;  %2699 = vmatpush1.bf16.msra.mxu1 %v3244_v56  ;;  %v3679_v26 = vld [vmem:[#allocation32_spill] sm:$0xff] }
 0x6b4   :  { %2669 = vmatprep.subr.bf16.mxu0 %v3162_v29  ;;  %2701 = vmatprep.subr.bf16.mxu1 %v3247_v57 }
 0x6b7   :  { %2671 = vmatpush1.bf16.msra.mxu0 %v3165_v36  ;;  %2703 = vmatpush1.bf16.msra.mxu1 %v3251_v2 }
 0x6b8   :  { %2673 = vmatprep.subr.bf16.mxu0 %v3168_v37  ;;  %2705 = vmatprep.subr.bf16.mxu1 %v3255_v3 }
 0x6bb   :  { %2675 = vmatpush1.bf16.msra.mxu0 %v3171_v44  ;;  %2707 = vmatpush1.bf16.msra.mxu1 %v3258_v11  ;;  %v3680_v44 = vld [vmem:[#allocation24_spill] sm:$0xff] }
 0x6bc   :  { %2677 = vmatprep.subr.bf16.mxu0 %v3174_v46  ;;  %2709 = vmatprep.subr.bf16.mxu1 %v3261_v12 }
 0x6bf   :  { %2679 = vmatpush1.bf16.msra.mxu0 %v3177_v52  ;;  %2711 = vmatpush1.bf16.msra.mxu1 %v3265_v20  ;;  %v3681_v52 = vld [vmem:[#allocation33_spill] sm:$0xff] }
 0x6c0   :  { %2681 = vmatprep.subr.bf16.mxu0 %v3180_v55  ;;  %2713 = vmatprep.subr.bf16.mxu1 %v3269_v21 }
 0x6c3   :  { %2683 = vmatpush1.bf16.msra.mxu0 %v3183_v60  ;;  %2715 = vmatpush1.bf16.msra.mxu1 %v3272_v30 }
 0x6c4   :  { %2685 = vmatprep.subr.bf16.mxu0 %v3186_v62  ;;  %2717 = vmatprep.subr.bf16.mxu1 %v3275_v19 }
 0x6c7   :  { %2687 = vmatpush1.bf16.msra.mxu0 %v3189_v4  ;;  %2719 = vmatpush1.bf16.msra.mxu1 %v3279_v0 }
 0x6c8   :  { %2188 = vmatprep.subr.bf16.mxu0 %v3667_v28 }
 0x77d   :  { %v1696_v9 = vpop.f32.mrb[12].mxu0  ;;  %v1767_v15 = vpop.f32.mrb[44].mxu1 }
 0x77e   :  { %v1772_v24 = vadd.f32 %v1696_v9, %v3678_v17  ;;  %v1774_v29 = vadd.f32 %v1767_v15, %v3679_v26  ;;  %v1698_v36 = vpop.f32.mrb[13].mxu0  ;;  %v1769_v37 = vpop.f32.mrb[45].mxu1 }
 0x77f   :  { %v1773_v46 = vadd.f32 %v1698_v36, %v3680_v44  ;;  %v1775_v55 = vadd.f32 %v1769_v37, %v3681_v52 }
 0x780   :  { %v2164_v60 = vmul.f32 -1.442695, %v1772_v24  ;;  %v2166_v4 = vmul.f32 -1.442695, %v1774_v29  ;;  %v2170_v29 = vld [vmem:[%s3645_s5] ss:$0 sm:$0xff] }
 0x781   :  { %v2165_v62 = vmul.f32 -1.442695, %v1773_v46 }
 0x782   :  { %2890 = vpow2.f32 %v2164_v60 }
 0x783   :  { %2892 = vpow2.f32 %v2165_v62 }
 0x784   :  { %2894 = vtanh.f32 %v1775_v55 }
 0x785   :  { %2896 = vpow2.f32 %v2166_v4 }
 0x78c   :  { %v2891_v40 = vpop.eup %2890 }
 0x78d   :  { %v1785_v41 = vadd.f32 1.0, %v2891_v40  ;;  %v2893_v48 = vpop.eup %2892 }
 0x78e   :  { %v1786_v49 = vadd.f32 1.0, %v2893_v48  ;;  %v2895_v56 = vpop.eup %2894 }
 0x78f   :  { %2898 = vrcp.f32 %v1785_v41  ;;  %v2897_v57 = vpop.eup %2896 }
 0x790   :  { %2900 = vrcp.f32 %v1786_v49  ;;  %v1787_v12 = vadd.f32 1.0, %v2897_v57 }
 0x792   :  { %2902 = vrcp.f32 %v1787_v12 }
 0x799   :  { %v2899_v2 = vpop.eup %2898 }
 0x79a   :  { %v1796_v3 = vmul.f32 %v2899_v2, %v2895_v56  ;;  %v2901_v11 = vpop.eup %2900 }
 0x79b   :  { %v1795_v20 = vmul.f32 %v2901_v11, %v3572_v53 }
 0x79c   :  { %v2903_v30 = vpop.eup %2902 }
 0x79d   :  { %v1797_v21 = vadd.f32 %v1796_v3, %v1795_v20 }
 0x79f   :  { %2904 = vtanh.f32 %v1797_v21 }
 0x7a9   :  { %v2905_v19 = vpop.eup %2904 }
 0x7aa   :  { %v1799_v0 = vmul.f32 %v2905_v19, %v2903_v30 }
 0x7ac   :  { %1870 = vmatmul.mubr.f32.vlgmr.msra.gmra.mrb[14].mxu0 %v1799_v0  ;;  %1941 = vmatmul.mubr.f32.vlgmr.msra.gmra.mrb[46].mxu1 %v1799_v0 }
 0x7ad   :  { %2189 = vmatpush3.bf16.msra.mxu0 %v2786_v59  ;;  %2204 = vmatprep.mubr.msk.bf16.mxu0 %vm3052_vm0, %v3667_v28 }
 0x7ae   :  { %2190 = vmatprep.subr.bf16.mxu0 %v3667_v28 }
 0x7b1   :  { %2191 = vmatpush3.bf16.msra.mxu0 %v2787_v54 }
 0x7b2   :  { %2192 = vmatprep.subr.bf16.mxu0 %v3667_v28 }
 0x7b5   :  { %2193 = vmatpush3.bf16.msra.mxu0 %v2788_v45 }
 0x7b6   :  { %2194 = vmatprep.subr.bf16.mxu0 %v3667_v28 }
 0x7b9   :  { %2195 = vmatpush3.bf16.msra.mxu0 %v2789_v14 }
 0x7ba   :  { %2196 = vmatprep.subr.bf16.mxu0 %v3667_v28 }
 0x7bd   :  { %2197 = vmatpush3.bf16.msra.mxu0 %v2790_v5 }
 0x7be   :  { %2198 = vmatprep.subr.bf16.mxu0 %v3667_v28 }
 0x7c1   :  { %2199 = vmatpush3.bf16.msra.mxu0 %v2791_v50 }
 0x7c2   :  { %2200 = vmatprep.subr.bf16.mxu0 %v3667_v28 }
 0x7c5   :  { %2201 = vmatpush3.bf16.msra.mxu0 %v2792_v61 }
 0x7c6   :  { %2202 = vmatprep.subr.bf16.mxu0 %v3667_v28 }
 0x7c9   :  { %2203 = vmatpush3.bf16.msra.mxu0 %v2793_v22 }
 0x87f   :  { %v1871_v23 = vpop.f32.mrb[14].mxu0  ;;  %v1942_v32 = vpop.f32.mrb[46].mxu1 }
 0x880   :  { %v1947_v35 = vadd.f32 %v1871_v23, %v3682_v13  ;;  %v1949_v27 = vadd.f32 %v1942_v32, %v3683_v8  ;;  %v1873_v31 = vpop.f32.mrb[15].mxu0  ;;  %v1944_v25 = vpop.f32.mrb[47].mxu1 }
 0x881   :  { %v1948_v16 = vadd.f32 %v1873_v31, %v3684_v7  ;;  %v1950_v38 = vadd.f32 %v1944_v25, %v3685_v6 }
 0x882   :  { %v2167_v33 = vmul.f32 -1.442695, %v1947_v35  ;;  %v2169_v51 = vmul.f32 -1.442695, %v1949_v27 }
 0x883   :  { %v2168_v47 = vmul.f32 -1.442695, %v1948_v16 }
 0x884   :  { %2906 = vpow2.f32 %v2167_v33 }
 0x885   :  { %2908 = vpow2.f32 %v2168_v47 }
 0x886   :  { %2910 = vtanh.f32 %v1950_v38 }
 0x887   :  { %2912 = vpow2.f32 %v2169_v51 }
 0x88e   :  { %v2907_v42 = vpop.eup %2906 }
 0x88f   :  { %v1960_v28 = vadd.f32 1.0, %v2907_v42  ;;  %v2909_v43 = vpop.eup %2908 }
 0x890   :  { %v1961_v18 = vadd.f32 1.0, %v2909_v43  ;;  %v2911_v63 = vpop.eup %2910 }
 0x891   :  { %2914 = vrcp.f32 %v1960_v28  ;;  %v2913_v58 = vpop.eup %2912 }
 0x892   :  { %2916 = vrcp.f32 %v1961_v18  ;;  %v1962_v34 = vadd.f32 1.0, %v2913_v58 }
 0x894   :  { %2918 = vrcp.f32 %v1962_v34 }
 0x89b   :  { %v2915_v10 = vpop.eup %2914 }
 0x89c   :  { %v1971_v53 = vmul.f32 %v2915_v10, %v2911_v63  ;;  %v2917_v1 = vpop.eup %2916 }
 0x89d   :  { %v1970_v39 = vmul.f32 %v2917_v1, %v1797_v21 }
 0x89e   :  { %v2919_v15 = vpop.eup %2918 }
 0x89f   :  { %v1972_v9 = vadd.f32 %v1971_v53, %v1970_v39 }
 0x8a1   :  { %2920 = vtanh.f32 %v1972_v9 }
 0x8ab   :  { %v2921_v17 = vpop.eup %2920 }
 0x8ac   :  { %v1974_v24 = vmul.f32 %v2921_v17, %v2919_v15 }
 0x8ae   :  { %v1980_v26 = vpack.c.bf16 %v1974_v24, %v1974_v24 }
 0x8b0   :  { %2205 = vmatmul.mubr.bf16.vlgmr.msra.gmra.mrb[16].mxu0 %v1980_v26 }
 0x983   :  { %v2086_v36 = vpop.f32.mrb[16].mxu0 }
 0x984   :  { %v2087_v37 = vadd.f32 %v2170_v29, %v2086_v36  ;;  %v2206_v44 = vpop.f32.mrb[17].mxu0 }
 0x985   :  { %v2089_v46 = vpop.f32.mrb[18].mxu0 }
 0x986   :  { %2092 = vst [vmem:[#allocation13] sm:$0xff] %v2087_v37  ;;  %v2207_v52 = vpop.f32.mrb[19].mxu0 }
 0x987   :  { %3021 = shalt.err (!%p3018_p8)
}
 0x988   :  { %s3022_s5 = scalar_lea.hbm %s3646_s6, 128 }
 0x989   :  { %p3023_p9 = scmp.ne.s32.totalorder %s3646_s6, %s3022_s5  ;;  %p3026_p10 = scmp.lt.u32.totalorder %s3022_s5, %s3646_s6 }
 0x98b   :  { %p3028_p11 = pnand %p3026_p10, %p3023_p9 }
 0x98d   :  { %3031 = shalt.err (!%p3028_p11)
}
 0x98e   :  { %2102 = dma.vmem_to_hbm [thread:$0]  %s2100_s26, 128, %s3646_s6, [#allocation7]  }
 0x98f   :  { %3038 = dma.done.wait [#allocation7], 128  }
 0x990   :  { %3039 = vsyncadd [#allocation7], 4294967168 }
 0x991   :  { %2106 = vsyncpa [#allocation6], 1 }
 0x992   :  { %2107 = vsyncpa [#allocation9], 1 }
 0x993   :  { %2108 = vsyncpa [#allocation12], 1 }
 0x994   :  { %2109 = vsyncpa [#allocation7], 1 }

</bundles_post_ra>
